<compile_context>
chip_gen: v7x
topology: tpu7x:2x2x1
jax: 0.10.0
libtpu: 0.0.40
codegen_flags: <defaults>
</compile_context>

<pallas_src>
import numpy as np
import jax
import jax.numpy as jnp
from jax.experimental import pallas as pl
from jax.experimental.pallas import tpu as pltpu

_LANES = 128
_SUBLANES = 8


def _round_up(x, m):
    return (x + m - 1) // m * m


def _pad2(a, rows, cols):
    return jnp.pad(a, ((0, rows - a.shape[0]), (0, cols - a.shape[1])))


def _make_fused_rnn_kernel(num_layers, T, B, Bp, Hp):
    """Fused multi-layer RNN + FC kernel (all refs VMEM-resident, grid-less)."""

    def kernel(*refs):
        x_ref = refs[0]                              # (T, Bp, Dp) time-major
        layer_refs = refs[1:1 + 3 * num_layers]      # (w_ih, w_hh, b) per layer
        fc_w_ref = refs[1 + 3 * num_layers]          # (Hp, Cp)
        fc_b_ref = refs[2 + 3 * num_layers]          # (1, Cp)
        out_ref = refs[3 + 3 * num_layers]           # (Tp, Cp) output
        last_ref = refs[4 + 3 * num_layers]          # (Tp, Hp) VMEM scratch

        Dp = x_ref.shape[2]

        # Load the (tiny) weights once.
        w_ih = [layer_refs[3 * l][...] for l in range(num_layers)]
        w_hh = [layer_refs[3 * l + 1][...] for l in range(num_layers)]
        bias = [layer_refs[3 * l + 2][...] for l in range(num_layers)]

        # Layer-0 input projection hoisted out of the sequential time loop:
        # one (T*Bp, Dp) x (Dp, Hp) matmul instead of T tiny ones.
        x_flat = x_ref[...].reshape(T * Bp, Dp)
        xw0 = (jnp.dot(x_flat, w_ih[0], preferred_element_type=jnp.float32)
               + bias[0]).reshape(T, Bp, Hp)

        # Zero the selected-row slab (rows >= T stay 0; their FC rows are
        # discarded by the wrapper anyway).
        last_ref[...] = jnp.zeros_like(last_ref)

        # Wavefront recurrence: time-outer, layer-inner, fully unrolled
        # (T and num_layers static & small).  h[l][t] depends only on
        # h[l-1][t] and h[l][t-1], so the scheduler can interleave layers.
        h = [jnp.zeros((Bp, Hp), jnp.float32) for _ in range(num_layers)]
        for t in range(T):
            h[0] = jnp.tanh(
                xw0[t]
                + jnp.dot(h[0], w_hh[0], preferred_element_type=jnp.float32))
            prev = h[0]
            for l in range(1, num_layers):
                h[l] = jnp.tanh(
                    jnp.dot(prev, w_ih[l], preferred_element_type=jnp.float32)
                    + bias[l]
                    + jnp.dot(h[l], w_hh[l], preferred_element_type=jnp.float32))
                prev = h[l]
            # torch `out[-1, :]` on a batch_first output == last BATCH element
            # (row B-1) for every timestep: store that single row eagerly.
            # NOTE: padded batch rows (b >= B) carry tanh(bias) values — rows
            # never mix and only row B-1 is read, so this is harmless.
            last_ref[pl.ds(t, 1), :] = prev[B - 1:B, :]

        # FC head on the selected rows: (Tp, Hp) x (Hp, Cp).
        out = (jnp.dot(last_ref[...], fc_w_ref[...],
                       preferred_element_type=jnp.float32) + fc_b_ref[...])
        out_ref[...] = out.astype(out_ref.dtype)

    return kernel


def prepare_params(params):
    """Zero-pad weights to lane-dense shapes (exact: padded units stay 0)."""
    D_in = params["layers"][0][0].shape[0]
    H = params["layers"][0][1].shape[0]
    C = params["fc_w"].shape[1]
    Dp = _round_up(D_in, _LANES)
    Hp = _round_up(H, _LANES)
    Cp = _round_up(C, _LANES)
    layers = []
    for i, (w_ih, w_hh, b) in enumerate(params["layers"]):
        in_rows = Dp if i == 0 else Hp
        layers.append((_pad2(w_ih, in_rows, Hp),
                       _pad2(w_hh, Hp, Hp),
                       _pad2(b, 1, Hp)))
    return {"layers": layers,
            "fc_w": _pad2(params["fc_w"], Hp, Cp),
            "fc_b": _pad2(params["fc_b"], 1, Cp),
            "in_padded": Dp, "hidden_padded": Hp,
            "classes_padded": Cp, "num_classes": C}


def rnn_forward(x, padded_params):
    """Fused Pallas forward. x: (B, T, input_size). Returns (T, num_classes)."""
    B, T, D = x.shape
    Bp = _round_up(B, _SUBLANES)
    Tp = _round_up(T, _SUBLANES)
    Dp = padded_params["in_padded"]
    Hp = padded_params["hidden_padded"]
    Cp = padded_params["classes_padded"]
    C = padded_params["num_classes"]
    num_layers = len(padded_params["layers"])

    # Batch-first -> time-major + zero-pad batch/feature dims in HBM (cheap
    # XLA-side layout work); replaces the old in-kernel permutation matmul.
    x_t = jnp.pad(jnp.transpose(x.astype(jnp.float32), (1, 0, 2)),
                  ((0, 0), (0, Bp - B), (0, Dp - D)))          # (T, Bp, Dp)

    inputs = [x_t]
    for w_ih, w_hh, b in padded_params["layers"]:
        inputs += [w_ih, w_hh, b]
    inputs += [padded_params["fc_w"], padded_params["fc_b"]]

    kernel = _make_fused_rnn_kernel(num_layers, T, B, Bp, Hp)
    out_padded = pl.pallas_call(
        kernel,
        out_shape=jax.ShapeDtypeStruct((Tp, Cp), jnp.float32),
        in_specs=[pl.BlockSpec(memory_space=pltpu.MemorySpace.VMEM)] * len(inputs),
        out_specs=pl.BlockSpec(memory_space=pltpu.MemorySpace.VMEM),
        scratch_shapes=[pltpu.VMEM((Tp, Hp), jnp.float32)],
        compiler_params=pltpu.CompilerParams(
            vmem_limit_bytes=32 * 1024 * 1024),
    )(*inputs)
    return out_padded[:T, :C]


def _reference_forward(x_btd, params):
    """Pure-JAX reference of the same semantics (for validation)."""
    B, T, _ = x_btd.shape
    h_seq = jnp.transpose(x_btd, (1, 0, 2))
    for (w_ih, w_hh, b) in params["layers"]:
        H = w_hh.shape[0]
        h = jnp.zeros((B, H), jnp.float32)
        hs = []
        for t in range(T):
            h = jnp.tanh(h_seq[t] @ w_ih + h @ w_hh + b[0])
            hs.append(h)
        h_seq = jnp.stack(hs, axis=0)
    out_bth = jnp.transpose(h_seq, (1, 0, 2))
    return out_bth[-1, :] @ params["fc_w"] + params["fc_b"][0]


if __name__ == "__main__":
    input_size, hidden_size, num_layers, num_classes = 16, 32, 2, 10
    B, T = 2, 8

    key = jax.random.PRNGKey(0)
    bound = 1.0 / float(np.sqrt(hidden_size))  # mimic torch nn.RNN/Linear init
    keys = jax.random.split(key, 4 * num_layers + 3)

    idx = 0
    layers = []
    for layer in range(num_layers):
        in_dim = input_size if layer == 0 else hidden_size
        w_ih = jax.random.uniform(keys[idx], (in_dim, hidden_size),
                                  jnp.float32, -bound, bound); idx += 1
        w_hh = jax.random.uniform(keys[idx], (hidden_size, hidden_size),
                                  jnp.float32, -bound, bound); idx += 1
        b_ih = jax.random.uniform(keys[idx], (hidden_size,),
                                  jnp.float32, -bound, bound); idx += 1
        b_hh = jax.random.uniform(keys[idx], (hidden_size,),
                                  jnp.float32, -bound, bound); idx += 1
        layers.append((w_ih, w_hh, (b_ih + b_hh)[None, :]))

    fc_w = jax.random.uniform(keys[idx], (hidden_size, num_classes),
                              jnp.float32, -bound, bound); idx += 1
    fc_b = jax.random.uniform(keys[idx], (num_classes,),
                              jnp.float32, -bound, bound)[None, :]; idx += 1
    x = jax.random.normal(keys[idx], (B, T, input_size), jnp.float32)

    params = {"layers": layers, "fc_w": fc_w, "fc_b": fc_b}
    padded = prepare_params(params)

    out = rnn_forward(x, padded)
    out = jax.block_until_ready(out)

    ref = _reference_forward(x, params)
    assert out.shape == (T, num_classes)
    assert jnp.allclose(out, ref, atol=1e-4, rtol=1e-4), "mismatch vs reference"

    print("KERNEL_OK")
</pallas_src>

<mosaic_0001>
module attributes {stable_mosaic.version = 11 : i64} {
  func.func @kernel(%arg0: memref<8x8x128xf32, #tpu.memory_space<vmem>>, %arg1: memref<128x128xf32, #tpu.memory_space<vmem>>, %arg2: memref<128x128xf32, #tpu.memory_space<vmem>>, %arg3: memref<1x128xf32, #tpu.memory_space<vmem>>, %arg4: memref<128x128xf32, #tpu.memory_space<vmem>>, %arg5: memref<128x128xf32, #tpu.memory_space<vmem>>, %arg6: memref<1x128xf32, #tpu.memory_space<vmem>>, %arg7: memref<128x128xf32, #tpu.memory_space<vmem>>, %arg8: memref<1x128xf32, #tpu.memory_space<vmem>>, %arg9: memref<8x128xf32, #tpu.memory_space<vmem>>, %arg10: memref<8x128xf32, #tpu.memory_space<vmem>>) attributes {dimension_semantics = [], scalar_prefetch = 0 : i64, scratch_operands = 1 : i64, tpu.core_type = #tpu.core_type<tc>} {
    %c0 = arith.constant 0 : index
    %c0_0 = arith.constant 0 : index
    %0 = vector.load %arg1[%c0, %c0_0] : memref<128x128xf32, #tpu.memory_space<vmem>>, vector<128x128xf32>
    %c0_1 = arith.constant 0 : index
    %c0_2 = arith.constant 0 : index
    %1 = vector.load %arg4[%c0_1, %c0_2] : memref<128x128xf32, #tpu.memory_space<vmem>>, vector<128x128xf32>
    %c0_3 = arith.constant 0 : index
    %c0_4 = arith.constant 0 : index
    %2 = vector.load %arg2[%c0_3, %c0_4] : memref<128x128xf32, #tpu.memory_space<vmem>>, vector<128x128xf32>
    %c0_5 = arith.constant 0 : index
    %c0_6 = arith.constant 0 : index
    %3 = vector.load %arg5[%c0_5, %c0_6] : memref<128x128xf32, #tpu.memory_space<vmem>>, vector<128x128xf32>
    %c0_7 = arith.constant 0 : index
    %c0_8 = arith.constant 0 : index
    %4 = vector.load %arg3[%c0_7, %c0_8] : memref<1x128xf32, #tpu.memory_space<vmem>>, vector<1x128xf32>
    %c0_9 = arith.constant 0 : index
    %c0_10 = arith.constant 0 : index
    %5 = vector.load %arg6[%c0_9, %c0_10] : memref<1x128xf32, #tpu.memory_space<vmem>>, vector<1x128xf32>
    %c0_11 = arith.constant 0 : index
    %c0_12 = arith.constant 0 : index
    %c0_13 = arith.constant 0 : index
    %6 = vector.load %arg0[%c0_11, %c0_12, %c0_13] : memref<8x8x128xf32, #tpu.memory_space<vmem>>, vector<8x8x128xf32>
    %7 = vector.shape_cast %6 : vector<8x8x128xf32> to vector<64x128xf32>
    %cst = arith.constant dense<0.000000e+00> : vector<64x128xf32>
    %8 = tpu.matmul %7, %0, %cst {dimension_numbers = #tpu.dot_dimension_numbers<[1], [0], [0], [1], [0, 0, 1, 1], [], []>} : vector<64x128xf32>, vector<128x128xf32>, vector<64x128xf32> -> vector<64x128xf32>
    %9 = vector.broadcast %4 : vector<1x128xf32> to vector<64x128xf32>
    %10 = arith.addf %8, %9 : vector<64x128xf32>
    %11 = vector.shape_cast %10 : vector<64x128xf32> to vector<8x8x128xf32>
    %cst_14 = arith.constant 0.000000e+00 : f32
    %12 = vector.broadcast %cst_14 : f32 to vector<8x128xf32>
    %c0_15 = arith.constant 0 : index
    %c0_16 = arith.constant 0 : index
    %13 = vector.load %arg10[%c0_15, %c0_16] : memref<8x128xf32, #tpu.memory_space<vmem>>, vector<8x128xf32>
    tpu.vector_store %arg10[%c0_15, %c0_16], %12 {strides = array<i32>} : memref<8x128xf32, #tpu.memory_space<vmem>>, vector<8x128xf32>,
    %cst_17 = arith.constant 0.000000e+00 : f32
    %14 = vector.broadcast %cst_17 : f32 to vector<8x128xf32>
    %cst_18 = arith.constant 0.000000e+00 : f32
    %15 = vector.broadcast %cst_18 : f32 to vector<8x128xf32>
    %16 = vector.extract_strided_slice %11 {offsets = [0, 0, 0], sizes = [1, 8, 128], strides = [1, 1, 1]} : vector<8x8x128xf32> to vector<1x8x128xf32>
    %17 = vector.shape_cast %16 : vector<1x8x128xf32> to vector<8x128xf32>
    %cst_19 = arith.constant dense<0.000000e+00> : vector<8x128xf32>
    %18 = tpu.matmul %14, %2, %cst_19 {dimension_numbers = #tpu.dot_dimension_numbers<[1], [0], [0], [1], [0, 0, 1, 1], [], []>} : vector<8x128xf32>, vector<128x128xf32>, vector<8x128xf32> -> vector<8x128xf32>
    %19 = arith.addf %17, %18 : vector<8x128xf32>
    %20 = math.tanh %19 : vector<8x128xf32>
    %cst_20 = arith.constant dense<0.000000e+00> : vector<8x128xf32>
    %21 = tpu.matmul %20, %1, %cst_20 {dimension_numbers = #tpu.dot_dimension_numbers<[1], [0], [0], [1], [0, 0, 1, 1], [], []>} : vector<8x128xf32>, vector<128x128xf32>, vector<8x128xf32> -> vector<8x128xf32>
    %22 = vector.broadcast %5 : vector<1x128xf32> to vector<8x128xf32>
    %23 = arith.addf %21, %22 : vector<8x128xf32>
    %cst_21 = arith.constant dense<0.000000e+00> : vector<8x128xf32>
    %24 = tpu.matmul %15, %3, %cst_21 {dimension_numbers = #tpu.dot_dimension_numbers<[1], [0], [0], [1], [0, 0, 1, 1], [], []>} : vector<8x128xf32>, vector<128x128xf32>, vector<8x128xf32> -> vector<8x128xf32>
    %25 = arith.addf %23, %24 : vector<8x128xf32>
    %26 = math.tanh %25 : vector<8x128xf32>
    %27 = vector.extract_strided_slice %26 {offsets = [1, 0], sizes = [1, 128], strides = [1, 1]} : vector<8x128xf32> to vector<1x128xf32>
    %c0_22 = arith.constant 0 : index
    %c0_23 = arith.constant 0 : index
    %28 = vector.load %arg10[%c0_22, %c0_23] : memref<8x128xf32, #tpu.memory_space<vmem>>, vector<1x128xf32>
    tpu.vector_store %arg10[%c0_22, %c0_23], %27 {strides = array<i32>} : memref<8x128xf32, #tpu.memory_space<vmem>>, vector<1x128xf32>,
    %29 = vector.extract_strided_slice %11 {offsets = [1, 0, 0], sizes = [1, 8, 128], strides = [1, 1, 1]} : vector<8x8x128xf32> to vector<1x8x128xf32>
    %30 = vector.shape_cast %29 : vector<1x8x128xf32> to vector<8x128xf32>
    %cst_24 = arith.constant dense<0.000000e+00> : vector<8x128xf32>
    %31 = tpu.matmul %20, %2, %cst_24 {dimension_numbers = #tpu.dot_dimension_numbers<[1], [0], [0], [1], [0, 0, 1, 1], [], []>} : vector<8x128xf32>, vector<128x128xf32>, vector<8x128xf32> -> vector<8x128xf32>
    %32 = arith.addf %30, %31 : vector<8x128xf32>
    %33 = math.tanh %32 : vector<8x128xf32>
    %cst_25 = arith.constant dense<0.000000e+00> : vector<8x128xf32>
    %34 = tpu.matmul %33, %1, %cst_25 {dimension_numbers = #tpu.dot_dimension_numbers<[1], [0], [0], [1], [0, 0, 1, 1], [], []>} : vector<8x128xf32>, vector<128x128xf32>, vector<8x128xf32> -> vector<8x128xf32>
    %35 = vector.broadcast %5 : vector<1x128xf32> to vector<8x128xf32>
    %36 = arith.addf %34, %35 : vector<8x128xf32>
    %cst_26 = arith.constant dense<0.000000e+00> : vector<8x128xf32>
    %37 = tpu.matmul %26, %3, %cst_26 {dimension_numbers = #tpu.dot_dimension_numbers<[1], [0], [0], [1], [0, 0, 1, 1], [], []>} : vector<8x128xf32>, vector<128x128xf32>, vector<8x128xf32> -> vector<8x128xf32>
    %38 = arith.addf %36, %37 : vector<8x128xf32>
    %39 = math.tanh %38 : vector<8x128xf32>
    %40 = vector.extract_strided_slice %39 {offsets = [1, 0], sizes = [1, 128], strides = [1, 1]} : vector<8x128xf32> to vector<1x128xf32>
    %c1 = arith.constant 1 : index
    %c0_27 = arith.constant 0 : index
    %41 = vector.load %arg10[%c1, %c0_27] : memref<8x128xf32, #tpu.memory_space<vmem>>, vector<1x128xf32>
    tpu.vector_store %arg10[%c1, %c0_27], %40 {strides = array<i32>} : memref<8x128xf32, #tpu.memory_space<vmem>>, vector<1x128xf32>,
    %42 = vector.extract_strided_slice %11 {offsets = [2, 0, 0], sizes = [1, 8, 128], strides = [1, 1, 1]} : vector<8x8x128xf32> to vector<1x8x128xf32>
    %43 = vector.shape_cast %42 : vector<1x8x128xf32> to vector<8x128xf32>
    %cst_28 = arith.constant dense<0.000000e+00> : vector<8x128xf32>
    %44 = tpu.matmul %33, %2, %cst_28 {dimension_numbers = #tpu.dot_dimension_numbers<[1], [0], [0], [1], [0, 0, 1, 1], [], []>} : vector<8x128xf32>, vector<128x128xf32>, vector<8x128xf32> -> vector<8x128xf32>
    %45 = arith.addf %43, %44 : vector<8x128xf32>
    %46 = math.tanh %45 : vector<8x128xf32>
    %cst_29 = arith.constant dense<0.000000e+00> : vector<8x128xf32>
    %47 = tpu.matmul %46, %1, %cst_29 {dimension_numbers = #tpu.dot_dimension_numbers<[1], [0], [0], [1], [0, 0, 1, 1], [], []>} : vector<8x128xf32>, vector<128x128xf32>, vector<8x128xf32> -> vector<8x128xf32>
    %48 = vector.broadcast %5 : vector<1x128xf32> to vector<8x128xf32>
    %49 = arith.addf %47, %48 : vector<8x128xf32>
    %cst_30 = arith.constant dense<0.000000e+00> : vector<8x128xf32>
    %50 = tpu.matmul %39, %3, %cst_30 {dimension_numbers = #tpu.dot_dimension_numbers<[1], [0], [0], [1], [0, 0, 1, 1], [], []>} : vector<8x128xf32>, vector<128x128xf32>, vector<8x128xf32> -> vector<8x128xf32>
    %51 = arith.addf %49, %50 : vector<8x128xf32>
    %52 = math.tanh %51 : vector<8x128xf32>
    %53 = vector.extract_strided_slice %52 {offsets = [1, 0], sizes = [1, 128], strides = [1, 1]} : vector<8x128xf32> to vector<1x128xf32>
    %c2 = arith.constant 2 : index
    %c0_31 = arith.constant 0 : index
    %54 = vector.load %arg10[%c2, %c0_31] : memref<8x128xf32, #tpu.memory_space<vmem>>, vector<1x128xf32>
    tpu.vector_store %arg10[%c2, %c0_31], %53 {strides = array<i32>} : memref<8x128xf32, #tpu.memory_space<vmem>>, vector<1x128xf32>,
    %55 = vector.extract_strided_slice %11 {offsets = [3, 0, 0], sizes = [1, 8, 128], strides = [1, 1, 1]} : vector<8x8x128xf32> to vector<1x8x128xf32>
    %56 = vector.shape_cast %55 : vector<1x8x128xf32> to vector<8x128xf32>
    %cst_32 = arith.constant dense<0.000000e+00> : vector<8x128xf32>
    %57 = tpu.matmul %46, %2, %cst_32 {dimension_numbers = #tpu.dot_dimension_numbers<[1], [0], [0], [1], [0, 0, 1, 1], [], []>} : vector<8x128xf32>, vector<128x128xf32>, vector<8x128xf32> -> vector<8x128xf32>
    %58 = arith.addf %56, %57 : vector<8x128xf32>
    %59 = math.tanh %58 : vector<8x128xf32>
    %cst_33 = arith.constant dense<0.000000e+00> : vector<8x128xf32>
    %60 = tpu.matmul %59, %1, %cst_33 {dimension_numbers = #tpu.dot_dimension_numbers<[1], [0], [0], [1], [0, 0, 1, 1], [], []>} : vector<8x128xf32>, vector<128x128xf32>, vector<8x128xf32> -> vector<8x128xf32>
    %61 = vector.broadcast %5 : vector<1x128xf32> to vector<8x128xf32>
    %62 = arith.addf %60, %61 : vector<8x128xf32>
    %cst_34 = arith.constant dense<0.000000e+00> : vector<8x128xf32>
    %63 = tpu.matmul %52, %3, %cst_34 {dimension_numbers = #tpu.dot_dimension_numbers<[1], [0], [0], [1], [0, 0, 1, 1], [], []>} : vector<8x128xf32>, vector<128x128xf32>, vector<8x128xf32> -> vector<8x128xf32>
    %64 = arith.addf %62, %63 : vector<8x128xf32>
    %65 = math.tanh %64 : vector<8x128xf32>
    %66 = vector.extract_strided_slice %65 {offsets = [1, 0], sizes = [1, 128], strides = [1, 1]} : vector<8x128xf32> to vector<1x128xf32>
    %c3 = arith.constant 3 : index
    %c0_35 = arith.constant 0 : index
    %67 = vector.load %arg10[%c3, %c0_35] : memref<8x128xf32, #tpu.memory_space<vmem>>, vector<1x128xf32>
    tpu.vector_store %arg10[%c3, %c0_35], %66 {strides = array<i32>} : memref<8x128xf32, #tpu.memory_space<vmem>>, vector<1x128xf32>,
    %68 = vector.extract_strided_slice %11 {offsets = [4, 0, 0], sizes = [1, 8, 128], strides = [1, 1, 1]} : vector<8x8x128xf32> to vector<1x8x128xf32>
    %69 = vector.shape_cast %68 : vector<1x8x128xf32> to vector<8x128xf32>
    %cst_36 = arith.constant dense<0.000000e+00> : vector<8x128xf32>
    %70 = tpu.matmul %59, %2, %cst_36 {dimension_numbers = #tpu.dot_dimension_numbers<[1], [0], [0], [1], [0, 0, 1, 1], [], []>} : vector<8x128xf32>, vector<128x128xf32>, vector<8x128xf32> -> vector<8x128xf32>
    %71 = arith.addf %69, %70 : vector<8x128xf32>
    %72 = math.tanh %71 : vector<8x128xf32>
    %cst_37 = arith.constant dense<0.000000e+00> : vector<8x128xf32>
    %73 = tpu.matmul %72, %1, %cst_37 {dimension_numbers = #tpu.dot_dimension_numbers<[1], [0], [0], [1], [0, 0, 1, 1], [], []>} : vector<8x128xf32>, vector<128x128xf32>, vector<8x128xf32> -> vector<8x128xf32>
    %74 = vector.broadcast %5 : vector<1x128xf32> to vector<8x128xf32>
    %75 = arith.addf %73, %74 : vector<8x128xf32>
    %cst_38 = arith.constant dense<0.000000e+00> : vector<8x128xf32>
    %76 = tpu.matmul %65, %3, %cst_38 {dimension_numbers = #tpu.dot_dimension_numbers<[1], [0], [0], [1], [0, 0, 1, 1], [], []>} : vector<8x128xf32>, vector<128x128xf32>, vector<8x128xf32> -> vector<8x128xf32>
    %77 = arith.addf %75, %76 : vector<8x128xf32>
    %78 = math.tanh %77 : vector<8x128xf32>
    %79 = vector.extract_strided_slice %78 {offsets = [1, 0], sizes = [1, 128], strides = [1, 1]} : vector<8x128xf32> to vector<1x128xf32>
    %c4 = arith.constant 4 : index
    %c0_39 = arith.constant 0 : index
    %80 = vector.load %arg10[%c4, %c0_39] : memref<8x128xf32, #tpu.memory_space<vmem>>, vector<1x128xf32>
    tpu.vector_store %arg10[%c4, %c0_39], %79 {strides = array<i32>} : memref<8x128xf32, #tpu.memory_space<vmem>>, vector<1x128xf32>,
    %81 = vector.extract_strided_slice %11 {offsets = [5, 0, 0], sizes = [1, 8, 128], strides = [1, 1, 1]} : vector<8x8x128xf32> to vector<1x8x128xf32>
    %82 = vector.shape_cast %81 : vector<1x8x128xf32> to vector<8x128xf32>
    %cst_40 = arith.constant dense<0.000000e+00> : vector<8x128xf32>
    %83 = tpu.matmul %72, %2, %cst_40 {dimension_numbers = #tpu.dot_dimension_numbers<[1], [0], [0], [1], [0, 0, 1, 1], [], []>} : vector<8x128xf32>, vector<128x128xf32>, vector<8x128xf32> -> vector<8x128xf32>
    %84 = arith.addf %82, %83 : vector<8x128xf32>
    %85 = math.tanh %84 : vector<8x128xf32>
    %cst_41 = arith.constant dense<0.000000e+00> : vector<8x128xf32>
    %86 = tpu.matmul %85, %1, %cst_41 {dimension_numbers = #tpu.dot_dimension_numbers<[1], [0], [0], [1], [0, 0, 1, 1], [], []>} : vector<8x128xf32>, vector<128x128xf32>, vector<8x128xf32> -> vector<8x128xf32>
    %87 = vector.broadcast %5 : vector<1x128xf32> to vector<8x128xf32>
    %88 = arith.addf %86, %87 : vector<8x128xf32>
    %cst_42 = arith.constant dense<0.000000e+00> : vector<8x128xf32>
    %89 = tpu.matmul %78, %3, %cst_42 {dimension_numbers = #tpu.dot_dimension_numbers<[1], [0], [0], [1], [0, 0, 1, 1], [], []>} : vector<8x128xf32>, vector<128x128xf32>, vector<8x128xf32> -> vector<8x128xf32>
    %90 = arith.addf %88, %89 : vector<8x128xf32>
    %91 = math.tanh %90 : vector<8x128xf32>
    %92 = vector.extract_strided_slice %91 {offsets = [1, 0], sizes = [1, 128], strides = [1, 1]} : vector<8x128xf32> to vector<1x128xf32>
    %c5 = arith.constant 5 : index
    %c0_43 = arith.constant 0 : index
    %93 = vector.load %arg10[%c5, %c0_43] : memref<8x128xf32, #tpu.memory_space<vmem>>, vector<1x128xf32>
    tpu.vector_store %arg10[%c5, %c0_43], %92 {strides = array<i32>} : memref<8x128xf32, #tpu.memory_space<vmem>>, vector<1x128xf32>,
    %94 = vector.extract_strided_slice %11 {offsets = [6, 0, 0], sizes = [1, 8, 128], strides = [1, 1, 1]} : vector<8x8x128xf32> to vector<1x8x128xf32>
    %95 = vector.shape_cast %94 : vector<1x8x128xf32> to vector<8x128xf32>
    %cst_44 = arith.constant dense<0.000000e+00> : vector<8x128xf32>
    %96 = tpu.matmul %85, %2, %cst_44 {dimension_numbers = #tpu.dot_dimension_numbers<[1], [0], [0], [1], [0, 0, 1, 1], [], []>} : vector<8x128xf32>, vector<128x128xf32>, vector<8x128xf32> -> vector<8x128xf32>
    %97 = arith.addf %95, %96 : vector<8x128xf32>
    %98 = math.tanh %97 : vector<8x128xf32>
    %cst_45 = arith.constant dense<0.000000e+00> : vector<8x128xf32>
    %99 = tpu.matmul %98, %1, %cst_45 {dimension_numbers = #tpu.dot_dimension_numbers<[1], [0], [0], [1], [0, 0, 1, 1], [], []>} : vector<8x128xf32>, vector<128x128xf32>, vector<8x128xf32> -> vector<8x128xf32>
    %100 = vector.broadcast %5 : vector<1x128xf32> to vector<8x128xf32>
    %101 = arith.addf %99, %100 : vector<8x128xf32>
    %cst_46 = arith.constant dense<0.000000e+00> : vector<8x128xf32>
    %102 = tpu.matmul %91, %3, %cst_46 {dimension_numbers = #tpu.dot_dimension_numbers<[1], [0], [0], [1], [0, 0, 1, 1], [], []>} : vector<8x128xf32>, vector<128x128xf32>, vector<8x128xf32> -> vector<8x128xf32>
    %103 = arith.addf %101, %102 : vector<8x128xf32>
    %104 = math.tanh %103 : vector<8x128xf32>
    %105 = vector.extract_strided_slice %104 {offsets = [1, 0], sizes = [1, 128], strides = [1, 1]} : vector<8x128xf32> to vector<1x128xf32>
    %c6 = arith.constant 6 : index
    %c0_47 = arith.constant 0 : index
    %106 = vector.load %arg10[%c6, %c0_47] : memref<8x128xf32, #tpu.memory_space<vmem>>, vector<1x128xf32>
    tpu.vector_store %arg10[%c6, %c0_47], %105 {strides = array<i32>} : memref<8x128xf32, #tpu.memory_space<vmem>>, vector<1x128xf32>,
    %107 = vector.extract_strided_slice %11 {offsets = [7, 0, 0], sizes = [1, 8, 128], strides = [1, 1, 1]} : vector<8x8x128xf32> to vector<1x8x128xf32>
    %108 = vector.shape_cast %107 : vector<1x8x128xf32> to vector<8x128xf32>
    %cst_48 = arith.constant dense<0.000000e+00> : vector<8x128xf32>
    %109 = tpu.matmul %98, %2, %cst_48 {dimension_numbers = #tpu.dot_dimension_numbers<[1], [0], [0], [1], [0, 0, 1, 1], [], []>} : vector<8x128xf32>, vector<128x128xf32>, vector<8x128xf32> -> vector<8x128xf32>
    %110 = arith.addf %108, %109 : vector<8x128xf32>
    %111 = math.tanh %110 : vector<8x128xf32>
    %cst_49 = arith.constant dense<0.000000e+00> : vector<8x128xf32>
    %112 = tpu.matmul %111, %1, %cst_49 {dimension_numbers = #tpu.dot_dimension_numbers<[1], [0], [0], [1], [0, 0, 1, 1], [], []>} : vector<8x128xf32>, vector<128x128xf32>, vector<8x128xf32> -> vector<8x128xf32>
    %113 = vector.broadcast %5 : vector<1x128xf32> to vector<8x128xf32>
    %114 = arith.addf %112, %113 : vector<8x128xf32>
    %cst_50 = arith.constant dense<0.000000e+00> : vector<8x128xf32>
    %115 = tpu.matmul %104, %3, %cst_50 {dimension_numbers = #tpu.dot_dimension_numbers<[1], [0], [0], [1], [0, 0, 1, 1], [], []>} : vector<8x128xf32>, vector<128x128xf32>, vector<8x128xf32> -> vector<8x128xf32>
    %116 = arith.addf %114, %115 : vector<8x128xf32>
    %117 = math.tanh %116 : vector<8x128xf32>
    %118 = vector.extract_strided_slice %117 {offsets = [1, 0], sizes = [1, 128], strides = [1, 1]} : vector<8x128xf32> to vector<1x128xf32>
    %c7 = arith.constant 7 : index
    %c0_51 = arith.constant 0 : index
    %119 = vector.load %arg10[%c7, %c0_51] : memref<8x128xf32, #tpu.memory_space<vmem>>, vector<1x128xf32>
    tpu.vector_store %arg10[%c7, %c0_51], %118 {strides = array<i32>} : memref<8x128xf32, #tpu.memory_space<vmem>>, vector<1x128xf32>,
    %c0_52 = arith.constant 0 : index
    %c0_53 = arith.constant 0 : index
    %120 = vector.load %arg10[%c0_52, %c0_53] : memref<8x128xf32, #tpu.memory_space<vmem>>, vector<8x128xf32>
    %c0_54 = arith.constant 0 : index
    %c0_55 = arith.constant 0 : index
    %121 = vector.load %arg7[%c0_54, %c0_55] : memref<128x128xf32, #tpu.memory_space<vmem>>, vector<128x128xf32>
    %cst_56 = arith.constant dense<0.000000e+00> : vector<8x128xf32>
    %122 = tpu.matmul %120, %121, %cst_56 {dimension_numbers = #tpu.dot_dimension_numbers<[1], [0], [0], [1], [0, 0, 1, 1], [], []>} : vector<8x128xf32>, vector<128x128xf32>, vector<8x128xf32> -> vector<8x128xf32>
    %c0_57 = arith.constant 0 : index
    %c0_58 = arith.constant 0 : index
    %123 = vector.load %arg8[%c0_57, %c0_58] : memref<1x128xf32, #tpu.memory_space<vmem>>, vector<1x128xf32>
    %124 = vector.broadcast %123 : vector<1x128xf32> to vector<8x128xf32>
    %125 = arith.addf %122, %124 : vector<8x128xf32>
    %c0_59 = arith.constant 0 : index
    %c0_60 = arith.constant 0 : index
    %126 = vector.load %arg9[%c0_59, %c0_60] : memref<8x128xf32, #tpu.memory_space<vmem>>, vector<8x128xf32>
    tpu.vector_store %arg9[%c0_59, %c0_60], %125 {strides = array<i32>} : memref<8x128xf32, #tpu.memory_space<vmem>>, vector<8x128xf32>,
    return
  }
}

</mosaic_0001>

<bundles_post_ra>
// kernel: tpu_custom_call.1
= control target key start
LH: loop header
LB: loop body
LE: loop exit
PB: predicated region body
PF: predicated region fallthrough
CT: control target
= control target key end

     0   :  { %14 = vsyncpa [#allocation4], 0  ;;  %s5103_s0 = inlined_call_operand.hbm [shape: f32[8,8,128], index: 0, kind: input, shape index: {}]   ;;  %s5104_s1 = inlined_call_operand.hbm [shape: f32[128,128], index: 1, kind: input, shape index: {}]   ;;  %s5105_s2 = inlined_call_operand.hbm [shape: f32[128,128], index: 2, kind: input, shape index: {}]   ;;  %s5106_s3 = inlined_call_operand.vmem [shape: f32[1,128], index: 3, kind: input, shape index: {}]   ;;  %s5107_s4 = inlined_call_operand.hbm [shape: f32[128,128], index: 4, kind: input, shape index: {}]   ;;  %s5108_s5 = inlined_call_operand.hbm [shape: f32[128,128], index: 5, kind: input, shape index: {}]   ;;  %s5109_s6 = inlined_call_operand.vmem [shape: f32[1,128], index: 6, kind: input, shape index: {}]   ;;  %s5110_s7 = inlined_call_operand.hbm [shape: f32[128,128], index: 7, kind: input, shape index: {}]   ;;  %s5111_s8 = inlined_call_operand.vmem [shape: f32[1,128], index: 8, kind: input, shape index: {}]   ;;  %s5112_s9 = inlined_call_operand.hbm [shape: f32[8,128], index: 9, kind: output, shape index: {}]  }
   0x1   :  { %15 = vsyncpa [#allocation7], 0 }
   0x2   :  { %16 = vsyncpa [#allocation10], 0 }
   0x3   :  { %17 = vsyncpa [#allocation13], 0 }
   0x4   :  { %18 = vsyncpa [#allocation5], 0  ;;  %s4375_s30 = smov [#allocation6]   ;;  %s4376_s11 = smov [#allocation9]  }
   0x5   :  { %s36_s10 = sshll.u32 %s4375_s30, 4  ;;  %s62_s12 = sshll.u32 %s4376_s11, 4  ;;  %s37_s10 = int_to_ptr.vmem [resolvable:$true] %s36_s10  ;;  %s4437_s12 = int_to_ptr.vmem [resolvable:$true] %s62_s12 }
   0x6   :  { %s4211_s15 = scalar_lea.hbm %s5104_s1, 2048 }
   0x7   :  { %p4212_p0 = scmp.ne.s32.totalorder %s5104_s1, %s4211_s15  ;;  %p4215_p1 = scmp.lt.u32.totalorder %s4211_s15, %s5104_s1 }
   0x9   :  { %p4217_p2 = pnand %p4215_p1, %p4212_p0 }
   0xb   :  { %4220 = shalt.err (!%p4217_p2)
}
   0xc   :  { %s4221_s20 = scalar_lea.vmem %s37_s10, 2048  ;;  %p4226_p4 = scmp.lt.s32.totalorder %s37_s10, %s37_s10 }
   0xd   :  { %p4222_p3 = scmp.ne.s32.totalorder %s37_s10, %s4221_s20  ;;  %p4227_p5 = scmp.lt.s32.totalorder %s4221_s20, %s4221_s20 }
   0xf   :  { %p4228_p6 = por %p4227_p5, %p4226_p4 }
  0x11   :  { %p4229_p7 = pnand %p4228_p6, %p4222_p3 }
  0x13   :  { %4232 = shalt.err (!%p4229_p7)
}
  0x14   :  { %s4377_s21 = smov 128   ;;  %s4378_s22 = smov 8  }
  0x15   :  { %42 = dma.hbm_to_vmem [thread:$0]  %s5104_s1, 2048, %s37_s10, [#allocation7], %s4377_s21, %s4377_s21, %s4378_s22  }
  0x16   :  { %s4233_s27 = scalar_lea.hbm %s5107_s4, 2048 }
  0x17   :  { %p4234_p8 = scmp.ne.s32.totalorder %s5107_s4, %s4233_s27  ;;  %p4237_p9 = scmp.lt.u32.totalorder %s4233_s27, %s5107_s4 }
  0x19   :  { %p4239_p10 = pnand %p4237_p9, %p4234_p8 }
  0x1b   :  { %4242 = shalt.err (!%p4239_p10)
}
  0x1c   :  { %s4243_s13 = scalar_lea.vmem %s4437_s12, 2048  ;;  %p4248_p12 = scmp.lt.s32.totalorder %s4437_s12, %s4437_s12 }
  0x1d   :  { %p4244_p11 = scmp.ne.s32.totalorder %s4437_s12, %s4243_s13  ;;  %p4249_p13 = scmp.lt.s32.totalorder %s4243_s13, %s4243_s13 }
  0x1f   :  { %p4250_p0 = por %p4249_p13, %p4248_p12 }
  0x21   :  { %p4251_p1 = pnand %p4250_p0, %p4244_p11 }
  0x23   :  { %4254 = shalt.err (!%p4251_p1)
}
  0x24   :  { %68 = dma.hbm_to_vmem [thread:$0]  %s5107_s4, 2048, %s4437_s12, [#allocation10], %s4377_s21, %s4377_s21, %s4378_s22  }
  0x25   :  { %s4379_s14 = smov [#allocation3]   ;;  %s4380_s16 = smov [#allocation8]  }
  0x26   :  { %s24_s15 = sshll.u32 %s4379_s14, 4  ;;  %s48_s17 = sshll.u32 %s4380_s16, 4  ;;  %s25_s15 = int_to_ptr.vmem [resolvable:$true] %s24_s15  ;;  %s4474_s17 = int_to_ptr.vmem [resolvable:$true] %s48_s17 }
  0x27   :  { %s4255_s20 = scalar_lea.hbm %s5103_s0, 1024 }
  0x28   :  { %p4256_p2 = scmp.ne.s32.totalorder %s5103_s0, %s4255_s20  ;;  %p4259_p3 = scmp.lt.u32.totalorder %s4255_s20, %s5103_s0 }
  0x2a   :  { %p4261_p4 = pnand %p4259_p3, %p4256_p2 }
  0x2c   :  { %4264 = shalt.err (!%p4261_p4)
}
  0x2d   :  { %s4265_s4 = scalar_lea.vmem %s25_s15, 1024  ;;  %p4270_p6 = scmp.lt.s32.totalorder %s25_s15, %s25_s15 }
  0x2e   :  { %p4266_p5 = scmp.ne.s32.totalorder %s25_s15, %s4265_s4  ;;  %p4271_p7 = scmp.lt.s32.totalorder %s4265_s4, %s4265_s4 }
  0x30   :  { %p4272_p8 = por %p4271_p7, %p4270_p6 }
  0x32   :  { %p4273_p9 = pnand %p4272_p8, %p4266_p5 }
  0x34   :  { %4276 = shalt.err (!%p4273_p9)
}
  0x35   :  { %30 = dma.hbm_to_vmem [thread:$0]  %s5103_s0, 1024, %s25_s15, [#allocation4], %s4377_s21, %s4377_s21, %s4378_s22  }
  0x36   :  { %s4277_s30 = scalar_lea.hbm %s5105_s2, 2048 }
  0x37   :  { %p4278_p10 = scmp.ne.s32.totalorder %s5105_s2, %s4277_s30  ;;  %p4281_p11 = scmp.lt.u32.totalorder %s4277_s30, %s5105_s2 }
  0x39   :  { %p4283_p12 = pnand %p4281_p11, %p4278_p10 }
  0x3b   :  { %4286 = shalt.err (!%p4283_p12)
}
  0x3c   :  { %s4287_s14 = scalar_lea.vmem %s4474_s17, 2048  ;;  %p4292_p0 = scmp.lt.s32.totalorder %s4474_s17, %s4474_s17 }
  0x3d   :  { %p4288_p13 = scmp.ne.s32.totalorder %s4474_s17, %s4287_s14  ;;  %p4293_p1 = scmp.lt.s32.totalorder %s4287_s14, %s4287_s14 }
  0x3f   :  { %p4294_p2 = por %p4293_p1, %p4292_p0 }
  0x41   :  { %p4295_p3 = pnand %p4294_p2, %p4288_p13 }
  0x43   :  { %4298 = shalt.err (!%p4295_p3)
}
  0x44   :  { %54 = dma.hbm_to_vmem [thread:$0]  %s5105_s2, 2048, %s4474_s17, [#allocation7], %s4377_s21, %s4377_s21, %s4378_s22  }
  0x45   :  { %s4381_s16 = smov [#allocation11]   ;;  %s4382_s19 = smov [#allocation12]  }
  0x46   :  { %s74_s18 = sshll.u32 %s4381_s16, 4  ;;  %s88_s20 = sshll.u32 %s4382_s19, 4  ;;  %s75_s18 = int_to_ptr.vmem [resolvable:$true] %s74_s18  ;;  %s4511_s20 = int_to_ptr.vmem [resolvable:$true] %s88_s20 }
  0x47   :  { %s4299_s25 = scalar_lea.hbm %s5108_s5, 2048 }
  0x48   :  { %p4300_p4 = scmp.ne.s32.totalorder %s5108_s5, %s4299_s25  ;;  %p4303_p5 = scmp.lt.u32.totalorder %s4299_s25, %s5108_s5 }
  0x4a   :  { %p4305_p6 = pnand %p4303_p5, %p4300_p4 }
  0x4c   :  { %4308 = shalt.err (!%p4305_p6)
}
  0x4d   :  { %s4309_s2 = scalar_lea.vmem %s75_s18, 2048  ;;  %p4314_p8 = scmp.lt.s32.totalorder %s75_s18, %s75_s18 }
  0x4e   :  { %p4310_p7 = scmp.ne.s32.totalorder %s75_s18, %s4309_s2  ;;  %p4315_p9 = scmp.lt.s32.totalorder %s4309_s2, %s4309_s2 }
  0x50   :  { %p4316_p10 = por %p4315_p9, %p4314_p8 }
  0x52   :  { %p4317_p11 = pnand %p4316_p10, %p4310_p7 }
  0x54   :  { %4320 = shalt.err (!%p4317_p11)
}
  0x55   :  { %80 = dma.hbm_to_vmem [thread:$0]  %s5108_s5, 2048, %s75_s18, [#allocation10], %s4377_s21, %s4377_s21, %s4378_s22  }
  0x56   :  { %s4321_s11 = scalar_lea.hbm %s5110_s7, 2048 }
  0x57   :  { %p4322_p12 = scmp.ne.s32.totalorder %s5110_s7, %s4321_s11  ;;  %p4325_p13 = scmp.lt.u32.totalorder %s4321_s11, %s5110_s7 }
  0x59   :  { %p4327_p0 = pnand %p4325_p13, %p4322_p12 }
  0x5b   :  { %4330 = shalt.err (!%p4327_p0)
}
  0x5c   :  { %s4331_s0 = scalar_lea.vmem %s4511_s20, 2048  ;;  %p4336_p2 = scmp.lt.s32.totalorder %s4511_s20, %s4511_s20 }
  0x5d   :  { %p4332_p1 = scmp.ne.s32.totalorder %s4511_s20, %s4331_s0  ;;  %p4337_p3 = scmp.lt.s32.totalorder %s4331_s0, %s4331_s0 }
  0x5f   :  { %p4338_p4 = por %p4337_p3, %p4336_p2 }
  0x61   :  { %p4339_p5 = pnand %p4338_p4, %p4332_p1 }
  0x63   :  { %4342 = shalt.err (!%p4339_p5)
}
  0x64   :  { %94 = dma.hbm_to_vmem [thread:$0]  %s5110_s7, 2048, %s4511_s20, [#allocation13], %s4377_s21, %s4377_s21, %s4378_s22  }
  0x65   :  { %4365 = dma.done.wait [#allocation4], 1024  }
  0x66   :  { %4366 = vsyncadd [#allocation4], 4294966272 }
  0x67   :  { %4367 = dma.done.wait [#allocation7], 4096  }
  0x68   :  { %4368 = vsyncadd [#allocation7], 4294963200 }
  0x69   :  { %4369 = dma.done.wait [#allocation10], 4096  }
  0x6a   :  { %4370 = vsyncadd [#allocation10], 4294963200 }
  0x6b   :  { %4371 = dma.done.wait [#allocation13], 2048  }
  0x6c   :  { %4372 = vsyncadd [#allocation13], 4294965248  ;;  %v4383_v0 = vmov 0.0|0.0   ;;  %vm4384_vm0 = vmmov 0   ;;  %v4385_v1 = vmov 0.0   ;;  %v115_v2 = vld [vmem:[#allocation6] sm:$0xff] }
  0x6d   :  { %3543 = vmatprep.subr.bf16.mxu1 %v4383_v0  ;;  %2668 = vmatprep.mubr.msk.f32.mxu1 %vm4384_vm0, %v4385_v1  ;;  %300 = vst [vmem:[#allocation2] sm:$0xff] %v4385_v1  ;;  %v116_v3 = vld [vmem:[#allocation6 + $0x8] sm:$0xff]  ;;  %v147_v4 = vld [vmem:[#allocation8] sm:$0xff]  ;;  %v117_v7 = vld [vmem:[#allocation6 + $0x10] sm:$0xff]  ;;  %s4386_s18 = smov [#allocation14]  }
  0x6e   :  { %v3511_v5 = vpack.c.bf16 %v116_v3, %v115_v2  ;;  %v148_v6 = vld [vmem:[#allocation8 + $0x8] sm:$0xff]  ;;  %v118_v8 = vld [vmem:[#allocation6 + $0x18] sm:$0xff]  ;;  %v149_v11 = vld [vmem:[#allocation8 + $0x10] sm:$0xff]  ;;  %s2128_s19 = sshll.u32 %s4386_s18, 4  ;;  %s2129_s19 = int_to_ptr.vmem [resolvable:$true] %s2128_s19 }
  0x6f   :  { %v4552_v9 = vpack.c.bf16 %v148_v6, %v147_v4  ;;  %v3515_v10 = vpack.c.bf16 %v118_v8, %v117_v7  ;;  %v150_v12 = vld [vmem:[#allocation8 + $0x18] sm:$0xff]  ;;  %v119_v13 = vld [vmem:[#allocation6 + $0x20] sm:$0xff]  ;;  %v120_v14 = vld [vmem:[#allocation6 + $0x28] sm:$0xff]  ;;  %s4343_s20 = scalar_lea.vmem %s2129_s19, 128  ;;  %p4348_p7 = scmp.lt.s32.totalorder %s2129_s19, %s2129_s19 }
  0x70   :  { %3512 = vmatprep.subr.bf16.mxu0 %v3511_v5  ;;  %v4555_v15 = vpack.c.bf16 %v150_v12, %v149_v11  ;;  %v3519_v16 = vpack.c.bf16 %v120_v14, %v119_v13  ;;  %v151_v17 = vld [vmem:[#allocation8 + $0x20] sm:$0xff]  ;;  %v152_v18 = vld [vmem:[#allocation8 + $0x28] sm:$0xff]  ;;  %v121_v19 = vld [vmem:[#allocation6 + $0x30] sm:$0xff]  ;;  %p4344_p6 = scmp.ne.s32.totalorder %s2129_s19, %s4343_s20  ;;  %p4349_p8 = scmp.lt.s32.totalorder %s4343_s20, %s4343_s20 }
  0x71   :  { %3514 = vmatpush3.bf16.msra.mxu0 %v3511_v5  ;;  %3545 = vmatpush3.bf16.msra.mxu1 %v4552_v9  ;;  %v122_v20 = vld [vmem:[#allocation6 + $0x38] sm:$0xff]  ;;  %v4559_v21 = vpack.c.bf16 %v152_v18, %v151_v17  ;;  %v153_v23 = vld [vmem:[#allocation8 + $0x30] sm:$0xff]  ;;  %v123_v25 = vld [vmem:[#allocation6 + $0x40] sm:$0xff] }
  0x72   :  { %3516 = vmatprep.subr.bf16.mxu0 %v3515_v10  ;;  %3546 = vmatprep.subr.bf16.mxu1 %v4383_v0  ;;  %v3523_v22 = vpack.c.bf16 %v122_v20, %v121_v19  ;;  %v154_v24 = vld [vmem:[#allocation8 + $0x38] sm:$0xff]  ;;  %v124_v26 = vld [vmem:[#allocation6 + $0x48] sm:$0xff]  ;;  %v181_v27 = vld [vmem:[#allocation3] sm:$0xff]  ;;  %p4350_p9 = por %p4349_p8, %p4348_p7 }
  0x73   :  { %2624 = vmatprep.mubr.f32.mxu0 %v181_v27  ;;  %v4563_v28 = vpack.c.bf16 %v154_v24, %v153_v23  ;;  %v3527_v29 = vpack.c.bf16 %v124_v26, %v123_v25  ;;  %v155_v30 = vld [vmem:[#allocation8 + $0x40] sm:$0xff]  ;;  %v156_v31 = vld [vmem:[#allocation8 + $0x48] sm:$0xff]  ;;  %v125_v32 = vld [vmem:[#allocation6 + $0x50] sm:$0xff] }
  0x74   :  { %v126_v33 = vld [vmem:[#allocation6 + $0x58] sm:$0xff]  ;;  %v4567_v34 = vpack.c.bf16 %v156_v31, %v155_v30  ;;  %v157_v36 = vld [vmem:[#allocation8 + $0x50] sm:$0xff]  ;;  %v127_v38 = vld [vmem:[#allocation6 + $0x60] sm:$0xff]  ;;  %p4351_p10 = pnand %p4350_p9, %p4344_p6 }
  0x75   :  { %3518 = vmatpush3.bf16.msra.mxu0 %v3515_v10  ;;  %3548 = vmatpush3.bf16.msra.mxu1 %v4555_v15  ;;  %v3531_v35 = vpack.c.bf16 %v126_v33, %v125_v32  ;;  %v158_v37 = vld [vmem:[#allocation8 + $0x58] sm:$0xff]  ;;  %v128_v39 = vld [vmem:[#allocation6 + $0x68] sm:$0xff]  ;;  %v159_v42 = vld [vmem:[#allocation8 + $0x60] sm:$0xff] }
  0x76   :  { %3520 = vmatprep.subr.bf16.mxu0 %v3519_v16  ;;  %3549 = vmatprep.subr.bf16.mxu1 %v4383_v0  ;;  %v4571_v40 = vpack.c.bf16 %v158_v37, %v157_v36  ;;  %v3535_v41 = vpack.c.bf16 %v128_v39, %v127_v38  ;;  %v160_v43 = vld [vmem:[#allocation8 + $0x68] sm:$0xff]  ;;  %v129_v44 = vld [vmem:[#allocation6 + $0x70] sm:$0xff]  ;;  %v130_v45 = vld [vmem:[#allocation6 + $0x78] sm:$0xff] }
  0x77   :  { %v4575_v46 = vpack.c.bf16 %v160_v43, %v159_v42  ;;  %v3539_v47 = vpack.c.bf16 %v130_v45, %v129_v44  ;;  %v161_v48 = vld [vmem:[#allocation8 + $0x70] sm:$0xff]  ;;  %v162_v49 = vld [vmem:[#allocation8 + $0x78] sm:$0xff]  ;;  %v131_v51 = vld [vmem:[#allocation9] sm:$0xff] }
  0x78   :  { %v4579_v50 = vpack.c.bf16 %v162_v49, %v161_v48  ;;  %v132_v52 = vld [vmem:[#allocation9 + $0x8] sm:$0xff]  ;;  %v133_v55 = vld [vmem:[#allocation9 + $0x10] sm:$0xff]  ;;  %v134_v56 = vld [vmem:[#allocation9 + $0x18] sm:$0xff] }
  0x79   :  { %3522 = vmatpush3.bf16.msra.mxu0 %v3519_v16  ;;  %3551 = vmatpush3.bf16.msra.mxu1 %v4559_v21  ;;  %v182_v53 = vld [vmem:[#allocation3 + $0x8] sm:$0xff]  ;;  %v4583_v54 = vpack.c.bf16 %v132_v52, %v131_v51  ;;  %v4590_v57 = vpack.c.bf16 %v134_v56, %v133_v55  ;;  %v135_v58 = vld [vmem:[#allocation9 + $0x20] sm:$0xff]  ;;  %v137_v61 = vld [vmem:[#allocation9 + $0x30] sm:$0xff] }
  0x7a   :  { %3524 = vmatprep.subr.bf16.mxu0 %v3523_v22  ;;  %3552 = vmatprep.subr.bf16.mxu1 %v4383_v0  ;;  %v136_v59 = vld [vmem:[#allocation9 + $0x28] sm:$0xff]  ;;  %v138_v62 = vld [vmem:[#allocation9 + $0x38] sm:$0xff]  ;;  %v139_v2 = vld [vmem:[#allocation9 + $0x40] sm:$0xff] }
  0x7b   :  { %v4598_v60 = vpack.c.bf16 %v136_v59, %v135_v58  ;;  %v4604_v63 = vpack.c.bf16 %v138_v62, %v137_v61  ;;  %v140_v3 = vld [vmem:[#allocation9 + $0x48] sm:$0xff]  ;;  %v183_v5 = vld [vmem:[#allocation3 + $0x10] sm:$0xff]  ;;  %v142_v7 = vld [vmem:[#allocation9 + $0x58] sm:$0xff] }
  0x7c   :  { %v4620_v4 = vpack.c.bf16 %v140_v3, %v139_v2  ;;  %v141_v6 = vld [vmem:[#allocation9 + $0x50] sm:$0xff]  ;;  %v184_v8 = vld [vmem:[#allocation3 + $0x18] sm:$0xff]  ;;  %v185_v11 = vld [vmem:[#allocation3 + $0x20] sm:$0xff] }
  0x7d   :  { %3526 = vmatpush3.bf16.msra.mxu0 %v3523_v22  ;;  %3554 = vmatpush3.bf16.msra.mxu1 %v4563_v28  ;;  %v4624_v10 = vpack.c.bf16 %v142_v7, %v141_v6  ;;  %v186_v12 = vld [vmem:[#allocation3 + $0x28] sm:$0xff]  ;;  %v143_v13 = vld [vmem:[#allocation9 + $0x60] sm:$0xff]  ;;  %v187_v16 = vld [vmem:[#allocation3 + $0x30] sm:$0xff] }
  0x7e   :  { %3528 = vmatprep.subr.bf16.mxu0 %v3527_v29  ;;  %3555 = vmatprep.subr.bf16.mxu1 %v4383_v0  ;;  %v144_v14 = vld [vmem:[#allocation9 + $0x68] sm:$0xff]  ;;  %v145_v18 = vld [vmem:[#allocation9 + $0x70] sm:$0xff]  ;;  %v146_v19 = vld [vmem:[#allocation9 + $0x78] sm:$0xff] }
  0x7f   :  { %v4628_v17 = vpack.c.bf16 %v144_v14, %v143_v13  ;;  %v188_v20 = vld [vmem:[#allocation3 + $0x38] sm:$0xff]  ;;  %v4631_v22 = vpack.c.bf16 %v146_v19, %v145_v18  ;;  %v163_v31 = vld [vmem:[#allocation11] sm:$0xff]  ;;  %v164_v32 = vld [vmem:[#allocation11 + $0x8] sm:$0xff] }
  0x80   :  { %v4641_v23 = vld [vmem:[%s5106_s3] ss:$0 sm:$0xff]  ;;  %v4646_v33 = vpack.c.bf16 %v164_v32, %v163_v31  ;;  %v167_v39 = vld [vmem:[#allocation11 + $0x20] sm:$0xff]  ;;  %v169_v43 = vld [vmem:[#allocation11 + $0x30] sm:$0xff] }
  0x81   :  { %3530 = vmatpush3.bf16.msra.mxu0 %v3527_v29  ;;  %3557 = vmatpush3.bf16.msra.mxu1 %v4567_v34  ;;  %v166_v36 = vld [vmem:[#allocation11 + $0x18] sm:$0xff]  ;;  %v172_v48 = vld [vmem:[#allocation11 + $0x48] sm:$0xff]  ;;  %v173_v51 = vld [vmem:[#allocation11 + $0x50] sm:$0xff] }
  0x82   :  { %3532 = vmatprep.subr.bf16.mxu0 %v3531_v35  ;;  %3558 = vmatprep.subr.bf16.mxu1 %v4383_v0  ;;  %v170_v44 = vld [vmem:[#allocation11 + $0x38] sm:$0xff]  ;;  %v175_v55 = vld [vmem:[#allocation11 + $0x60] sm:$0xff]  ;;  %v176_v56 = vld [vmem:[#allocation11 + $0x68] sm:$0xff] }
  0x83   :  { %v4665_v45 = vpack.c.bf16 %v170_v44, %v169_v43  ;;  %v174_v52 = vld [vmem:[#allocation11 + $0x58] sm:$0xff]  ;;  %v4683_v58 = vpack.c.bf16 %v176_v56, %v175_v55  ;;  %v177_v59 = vld [vmem:[#allocation11 + $0x70] sm:$0xff] }
  0x84   :  { %v178_v61 = vld [vmem:[#allocation11 + $0x78] sm:$0xff] }
  0x85   :  { %3534 = vmatpush3.bf16.msra.mxu0 %v3531_v35  ;;  %3560 = vmatpush3.bf16.msra.mxu1 %v4571_v40  ;;  %v165_v35 = vld [vmem:[#allocation11 + $0x10] sm:$0xff]  ;;  %v4689_v62 = vpack.c.bf16 %v178_v61, %v177_v59  ;;  %v4754_v18 = vld [vmem:[%s5109_s6] ss:$0 sm:$0xff] }
  0x86   :  { %3536 = vmatprep.subr.bf16.mxu0 %v3535_v41  ;;  %3561 = vmatprep.subr.bf16.mxu1 %v4383_v0  ;;  %v4649_v38 = vpack.c.bf16 %v166_v36, %v165_v35 }
  0x89   :  { %3538 = vmatpush3.bf16.msra.mxu0 %v3535_v41  ;;  %3563 = vmatpush3.bf16.msra.mxu1 %v4575_v46  ;;  %v168_v41 = vld [vmem:[#allocation11 + $0x28] sm:$0xff] }
  0x8a   :  { %3540 = vmatprep.subr.bf16.mxu0 %v3539_v47  ;;  %3564 = vmatprep.subr.bf16.mxu1 %v4383_v0  ;;  %v4659_v42 = vpack.c.bf16 %v168_v41, %v167_v39 }
  0x8d   :  { %3542 = vmatpush3.bf16.msra.mxu0 %v3539_v47  ;;  %3566 = vmatpush3.bf16.msra.mxu1 %v4579_v50  ;;  %v171_v47 = vld [vmem:[#allocation11 + $0x40] sm:$0xff] }
  0x8e   :  { %3567 = vmatprep.subr.bf16.mxu0 %v4383_v0  ;;  %3615 = vmatprep.subr.bf16.mxu1 %v4383_v0  ;;  %v4671_v49 = vpack.c.bf16 %v172_v48, %v171_v47 }
  0x90   :  { %2625 = vmatmul.mubr.f32.vlgmr.msra.gmra.mrb[0].mxu0 %v182_v53  ;;  %2669 = vmatmul.mubr.f32.vlgmr.msra.gmra.mrb[0].mxu1 %v4385_v1  ;;  %v4677_v53 = vpack.c.bf16 %v174_v52, %v173_v51 }
  0x91   :  { %3569 = vmatpush3.bf16.msra.mxu0 %v4583_v54  ;;  %3617 = vmatpush3.bf16.msra.mxu1 %v4552_v9 }
  0x92   :  { %3570 = vmatprep.subr.bf16.mxu0 %v4383_v0  ;;  %3618 = vmatprep.subr.bf16.mxu1 %v4383_v0 }
  0x93   :  { %2773 = vmatprep.mubr.msk.f32.mxu1 %vm4384_vm0, %v4385_v1  ;;  %2627 = vmatprep.mubr.f32.mxu0 %v183_v5 }
  0x94   :  { %2628 = vmatmul.mubr.f32.gmra.mrb[2].mxu0 %v184_v8 }
  0x95   :  { %3572 = vmatpush3.bf16.msra.mxu0 %v4590_v57  ;;  %3620 = vmatpush3.bf16.msra.mxu1 %v4555_v15 }
  0x96   :  { %3573 = vmatprep.subr.bf16.mxu0 %v4383_v0  ;;  %3621 = vmatprep.subr.bf16.mxu1 %v4383_v0 }
  0x97   :  { %2630 = vmatprep.mubr.f32.mxu0 %v185_v11 }
  0x98   :  { %2631 = vmatmul.mubr.f32.gmra.mrb[4].mxu0 %v186_v12 }
  0x99   :  { %3575 = vmatpush3.bf16.msra.mxu0 %v4598_v60  ;;  %3623 = vmatpush3.bf16.msra.mxu1 %v4559_v21 }
  0x9a   :  { %3576 = vmatprep.subr.bf16.mxu0 %v4383_v0  ;;  %3624 = vmatprep.subr.bf16.mxu1 %v4383_v0 }
  0x9b   :  { %2633 = vmatprep.mubr.f32.mxu0 %v187_v16 }
  0x9c   :  { %2634 = vmatmul.mubr.f32.gmra.mrb[6].mxu0 %v188_v20 }
  0x9d   :  { %3578 = vmatpush3.bf16.msra.mxu0 %v4604_v63  ;;  %3626 = vmatpush3.bf16.msra.mxu1 %v4563_v28 }
  0x9e   :  { %3579 = vmatprep.subr.bf16.mxu0 %v4383_v0  ;;  %3627 = vmatprep.subr.bf16.mxu1 %v4383_v0 }
  0x9f   :  { %2703 = vmatprep.mubr.msk.f32.mxu0 %vm4384_vm0, %v4385_v1 }
  0xa1   :  { %3629 = vmatpush3.bf16.msra.mxu1 %v4567_v34  ;;  %3581 = vmatpush3.bf16.msra.mxu0 %v4620_v4 }
  0xa2   :  { %3630 = vmatprep.subr.bf16.mxu1 %v4383_v0  ;;  %3582 = vmatprep.subr.bf16.mxu0 %v4383_v0 }
  0xa5   :  { %3632 = vmatpush3.bf16.msra.mxu1 %v4571_v40  ;;  %3584 = vmatpush3.bf16.msra.mxu0 %v4624_v10 }
  0xa6   :  { %3633 = vmatprep.subr.bf16.mxu1 %v4383_v0  ;;  %3585 = vmatprep.subr.bf16.mxu0 %v4383_v0 }
  0xa9   :  { %3635 = vmatpush3.bf16.msra.mxu1 %v4575_v46  ;;  %3587 = vmatpush3.bf16.msra.mxu0 %v4628_v17 }
  0xaa   :  { %3636 = vmatprep.subr.bf16.mxu1 %v4383_v0  ;;  %3588 = vmatprep.subr.bf16.mxu0 %v4383_v0 }
  0xad   :  { %3638 = vmatpush3.bf16.msra.mxu1 %v4579_v50  ;;  %3590 = vmatpush3.bf16.msra.mxu0 %v4631_v22 }
  0xae   :  { %3639 = vmatprep.subr.bf16.mxu1 %v4383_v0  ;;  %3591 = vmatprep.subr.bf16.mxu0 %v4383_v0 }
 0x163   :  { %v4643_v24 = vpop.f32.mrb[0].mxu0  ;;  %v367_v25 = vpop.f32.mrb[0].mxu1 }
 0x164   :  { %v261_v26 = vpop.f32.mrb[1].mxu0  ;;  %v2670_v27 = vpop.f32.mrb[1].mxu1  ;;  %v267_v11 = vadd.f32 %v4643_v24, %v4641_v23 }
 0x165   :  { %v262_v29 = vadd.f32 %v4641_v23, %v261_v26 }
 0x167   :  { %v371_v30 = vadd.f32 %v367_v25, %v262_v29  ;;  %v4717_v2 = vpop.f32.mrb[2].mxu0 }
 0x168   :  { %v4719_v3 = vpop.f32.mrb[3].mxu0  ;;  %v277_v39 = vadd.f32 %v4717_v2, %v4641_v23 }
 0x169   :  { %4179 = vtanh.f32 %v371_v30  ;;  %v272_v26 = vadd.f32 %v4641_v23, %v4719_v3 }
 0x16b   :  { %v4721_v5 = vpop.f32.mrb[4].mxu0 }
 0x16c   :  { %v4723_v6 = vpop.f32.mrb[5].mxu0 }
 0x16d   :  { %v282_v56 = vadd.f32 %v4641_v23, %v4723_v6 }
 0x16f   :  { %v4725_v7 = vpop.f32.mrb[6].mxu0 }
 0x170   :  { %v4727_v8 = vpop.f32.mrb[7].mxu0 }
 0x173   :  { %v4180_v37 = vpop.eup %4179 }
 0x174   :  { %2704 = vmatmul.mubr.f32.vlgmr.msra.gmra.mrb[8].mxu0 %v4180_v37  ;;  %2774 = vmatmul.mubr.f32.vlgmr.msra.gmra.mrb[2].mxu1 %v4180_v37 }
 0x175   :  { %3593 = vmatpush3.bf16.msra.mxu0 %v4646_v33  ;;  %2738 = vmatprep.mubr.msk.f32.mxu0 %vm4384_vm0, %v4385_v1 }
 0x176   :  { %3594 = vmatprep.subr.bf16.mxu0 %v4383_v0  ;;  %3641 = vmatpush3.bf16.msra.mxu1 %v4583_v54 }
 0x177   :  { %3642 = vmatprep.subr.bf16.mxu1 %v4383_v0  ;;  %2808 = vmatprep.mubr.msk.f32.mxu1 %vm4384_vm0, %v4385_v1 }
 0x179   :  { %3596 = vmatpush3.bf16.msra.mxu0 %v4649_v38 }
 0x17a   :  { %3597 = vmatprep.subr.bf16.mxu0 %v4383_v0  ;;  %3644 = vmatpush3.bf16.msra.mxu1 %v4590_v57 }
 0x17b   :  { %3645 = vmatprep.subr.bf16.mxu1 %v4383_v0 }
 0x17d   :  { %3599 = vmatpush3.bf16.msra.mxu0 %v4659_v42 }
 0x17e   :  { %3600 = vmatprep.subr.bf16.mxu0 %v4383_v0  ;;  %3647 = vmatpush3.bf16.msra.mxu1 %v4598_v60 }
 0x17f   :  { %3648 = vmatprep.subr.bf16.mxu1 %v4383_v0 }
 0x181   :  { %3602 = vmatpush3.bf16.msra.mxu0 %v4665_v45 }
 0x182   :  { %3603 = vmatprep.subr.bf16.mxu0 %v4383_v0  ;;  %3650 = vmatpush3.bf16.msra.mxu1 %v4604_v63 }
 0x183   :  { %3651 = vmatprep.subr.bf16.mxu1 %v4383_v0 }
 0x185   :  { %3605 = vmatpush3.bf16.msra.mxu0 %v4671_v49 }
 0x186   :  { %3606 = vmatprep.subr.bf16.mxu0 %v4383_v0  ;;  %3653 = vmatpush3.bf16.msra.mxu1 %v4620_v4 }
 0x187   :  { %3654 = vmatprep.subr.bf16.mxu1 %v4383_v0 }
 0x189   :  { %3608 = vmatpush3.bf16.msra.mxu0 %v4677_v53 }
 0x18a   :  { %3609 = vmatprep.subr.bf16.mxu0 %v4383_v0  ;;  %3656 = vmatpush3.bf16.msra.mxu1 %v4624_v10 }
 0x18b   :  { %3657 = vmatprep.subr.bf16.mxu1 %v4383_v0 }
 0x18d   :  { %3611 = vmatpush3.bf16.msra.mxu0 %v4683_v58 }
 0x18e   :  { %3612 = vmatprep.subr.bf16.mxu0 %v4383_v0  ;;  %3659 = vmatpush3.bf16.msra.mxu1 %v4628_v17 }
 0x18f   :  { %3660 = vmatprep.subr.bf16.mxu1 %v4383_v0 }
 0x191   :  { %3614 = vmatpush3.bf16.msra.mxu0 %v4689_v62 }
 0x192   :  { %3687 = vmatprep.subr.bf16.mxu0 %v4383_v0  ;;  %3662 = vmatpush3.bf16.msra.mxu1 %v4631_v22 }
 0x193   :  { %3663 = vmatprep.subr.bf16.mxu1 %v4383_v0 }
 0x194   :  { %2739 = vmatmul.mubr.f32.vlgmr.msra.gmra.mrb[8].mxu0 %v4385_v1 }
 0x195   :  { %3689 = vmatpush3.bf16.msra.mxu0 %v4552_v9  ;;  %2878 = vmatprep.mubr.msk.f32.mxu0 %vm4384_vm0, %v4385_v1 }
 0x196   :  { %3690 = vmatprep.subr.bf16.mxu0 %v4383_v0 }
 0x199   :  { %3692 = vmatpush3.bf16.msra.mxu0 %v4555_v15 }
 0x19a   :  { %3693 = vmatprep.subr.bf16.mxu0 %v4383_v0 }
 0x19d   :  { %3695 = vmatpush3.bf16.msra.mxu0 %v4559_v21 }
 0x19e   :  { %3696 = vmatprep.subr.bf16.mxu0 %v4383_v0 }
 0x1a1   :  { %3698 = vmatpush3.bf16.msra.mxu0 %v4563_v28 }
 0x1a2   :  { %3699 = vmatprep.subr.bf16.mxu0 %v4383_v0 }
 0x1a5   :  { %3701 = vmatpush3.bf16.msra.mxu0 %v4567_v34 }
 0x1a6   :  { %3702 = vmatprep.subr.bf16.mxu0 %v4383_v0 }
 0x1a9   :  { %3704 = vmatpush3.bf16.msra.mxu0 %v4571_v40 }
 0x1aa   :  { %3705 = vmatprep.subr.bf16.mxu0 %v4383_v0 }
 0x1ad   :  { %3707 = vmatpush3.bf16.msra.mxu0 %v4575_v46 }
 0x1ae   :  { %3708 = vmatprep.subr.bf16.mxu0 %v4383_v0 }
 0x1b1   :  { %3710 = vmatpush3.bf16.msra.mxu0 %v4579_v50 }
 0x1b2   :  { %3711 = vmatprep.subr.bf16.mxu0 %v4383_v0 }
 0x247   :  { %v588_v12 = vpop.f32.mrb[2].mxu1 }
 0x248   :  { %v592_v13 = vadd.f32 %v588_v12, %v267_v11  ;;  %v2775_v14 = vpop.f32.mrb[3].mxu1 }
 0x249   :  { %v287_v14 = vadd.f32 %v4721_v5, %v4641_v23 }
 0x24a   :  { %4181 = vtanh.f32 %v592_v13 }
 0x254   :  { %v4182_v16 = vpop.eup %4181 }
 0x255   :  { %2809 = vmatmul.mubr.f32.vlgmr.msra.gmra.mrb[4].mxu1 %v4182_v16  ;;  %2879 = vmatmul.mubr.f32.vlgmr.msra.gmra.mrb[10].mxu0 %v4182_v16 }
 0x256   :  { %3665 = vmatpush3.bf16.msra.mxu1 %v4646_v33  ;;  %2843 = vmatprep.mubr.msk.f32.mxu1 %vm4384_vm0, %v4385_v1 }
 0x257   :  { %3666 = vmatprep.subr.bf16.mxu1 %v4383_v0  ;;  %3713 = vmatpush3.bf16.msra.mxu0 %v4583_v54 }
 0x258   :  { %3714 = vmatprep.subr.bf16.mxu0 %v4383_v0  ;;  %2913 = vmatprep.mubr.msk.f32.mxu0 %vm4384_vm0, %v4385_v1 }
 0x25a   :  { %3668 = vmatpush3.bf16.msra.mxu1 %v4649_v38 }
 0x25b   :  { %3669 = vmatprep.subr.bf16.mxu1 %v4383_v0  ;;  %3716 = vmatpush3.bf16.msra.mxu0 %v4590_v57 }
 0x25c   :  { %3717 = vmatprep.subr.bf16.mxu0 %v4383_v0 }
 0x25e   :  { %3671 = vmatpush3.bf16.msra.mxu1 %v4659_v42 }
 0x25f   :  { %3672 = vmatprep.subr.bf16.mxu1 %v4383_v0  ;;  %3719 = vmatpush3.bf16.msra.mxu0 %v4598_v60 }
 0x260   :  { %3720 = vmatprep.subr.bf16.mxu0 %v4383_v0 }
 0x262   :  { %3674 = vmatpush3.bf16.msra.mxu1 %v4665_v45 }
 0x263   :  { %3675 = vmatprep.subr.bf16.mxu1 %v4383_v0  ;;  %3722 = vmatpush3.bf16.msra.mxu0 %v4604_v63 }
 0x264   :  { %3723 = vmatprep.subr.bf16.mxu0 %v4383_v0 }
 0x266   :  { %3677 = vmatpush3.bf16.msra.mxu1 %v4671_v49 }
 0x267   :  { %v515_v19 = vpop.f32.mrb[8].mxu0  ;;  %3678 = vmatprep.subr.bf16.mxu1 %v4383_v0  ;;  %3725 = vmatpush3.bf16.msra.mxu0 %v4620_v4 }
 0x268   :  { %v4143_v20 = vadd.f32 %v4754_v18, %v515_v19  ;;  %v2740_v24 = vpop.f32.mrb[9].mxu0  ;;  %3726 = vmatprep.subr.bf16.mxu0 %v4383_v0 }
 0x26a   :  { %4183 = vtanh.f32 %v4143_v20  ;;  %3680 = vmatpush3.bf16.msra.mxu1 %v4677_v53 }
 0x26b   :  { %3681 = vmatprep.subr.bf16.mxu1 %v4383_v0  ;;  %3728 = vmatpush3.bf16.msra.mxu0 %v4624_v10 }
 0x26c   :  { %3729 = vmatprep.subr.bf16.mxu0 %v4383_v0 }
 0x26e   :  { %3683 = vmatpush3.bf16.msra.mxu1 %v4683_v58 }
 0x26f   :  { %3684 = vmatprep.subr.bf16.mxu1 %v4383_v0  ;;  %3731 = vmatpush3.bf16.msra.mxu0 %v4628_v17 }
 0x270   :  { %3732 = vmatprep.subr.bf16.mxu0 %v4383_v0 }
 0x272   :  { %3686 = vmatpush3.bf16.msra.mxu1 %v4689_v62 }
 0x273   :  { %3759 = vmatprep.subr.bf16.mxu1 %v4383_v0  ;;  %3734 = vmatpush3.bf16.msra.mxu0 %v4631_v22 }
 0x274   :  { %v4184_v25 = vpop.eup %4183  ;;  %3735 = vmatprep.subr.bf16.mxu0 %v4383_v0 }
 0x275   :  { %521 = vst [vmem:[#allocation2 - $0x1] sm:$0x2] %v4184_v25  ;;  %2844 = vmatmul.mubr.f32.vlgmr.msra.gmra.mrb[4].mxu1 %v4184_v25 }
 0x276   :  { %3761 = vmatpush3.bf16.msra.mxu1 %v4552_v9  ;;  %2983 = vmatprep.mubr.msk.f32.mxu1 %vm4384_vm0, %v4385_v1 }
 0x277   :  { %3762 = vmatprep.subr.bf16.mxu1 %v4383_v0 }
 0x27a   :  { %3764 = vmatpush3.bf16.msra.mxu1 %v4555_v15 }
 0x27b   :  { %3765 = vmatprep.subr.bf16.mxu1 %v4383_v0 }
 0x27e   :  { %3767 = vmatpush3.bf16.msra.mxu1 %v4559_v21 }
 0x27f   :  { %3768 = vmatprep.subr.bf16.mxu1 %v4383_v0 }
 0x282   :  { %3770 = vmatpush3.bf16.msra.mxu1 %v4563_v28 }
 0x283   :  { %3771 = vmatprep.subr.bf16.mxu1 %v4383_v0 }
 0x286   :  { %3773 = vmatpush3.bf16.msra.mxu1 %v4567_v34 }
 0x287   :  { %3774 = vmatprep.subr.bf16.mxu1 %v4383_v0 }
 0x28a   :  { %3776 = vmatpush3.bf16.msra.mxu1 %v4571_v40 }
 0x28b   :  { %3777 = vmatprep.subr.bf16.mxu1 %v4383_v0 }
 0x28e   :  { %3779 = vmatpush3.bf16.msra.mxu1 %v4575_v46 }
 0x28f   :  { %3780 = vmatprep.subr.bf16.mxu1 %v4383_v0 }
 0x292   :  { %3782 = vmatpush3.bf16.msra.mxu1 %v4579_v50 }
 0x293   :  { %3783 = vmatprep.subr.bf16.mxu1 %v4383_v0 }
 0x328   :  { %v803_v27 = vpop.f32.mrb[10].mxu0 }
 0x329   :  { %v807_v29 = vadd.f32 %v803_v27, %v272_v26  ;;  %v2880_v30 = vpop.f32.mrb[11].mxu0 }
 0x32a   :  { %v297_v30 = vadd.f32 %v4725_v7, %v4641_v23  ;;  %v2036_v7 = vld [vmem:[#allocation12 + $0x40] sm:$0xff] }
 0x32b   :  { %4185 = vtanh.f32 %v807_v29 }
 0x335   :  { %v4186_v31 = vpop.eup %4185 }
 0x336   :  { %2914 = vmatmul.mubr.f32.vlgmr.msra.gmra.mrb[12].mxu0 %v4186_v31  ;;  %2984 = vmatmul.mubr.f32.vlgmr.msra.gmra.mrb[6].mxu1 %v4186_v31 }
 0x337   :  { %3737 = vmatpush3.bf16.msra.mxu0 %v4646_v33  ;;  %2948 = vmatprep.mubr.msk.f32.mxu0 %vm4384_vm0, %v4385_v1 }
 0x338   :  { %3738 = vmatprep.subr.bf16.mxu0 %v4383_v0  ;;  %3785 = vmatpush3.bf16.msra.mxu1 %v4583_v54 }
 0x339   :  { %3786 = vmatprep.subr.bf16.mxu1 %v4383_v0  ;;  %3018 = vmatprep.mubr.msk.f32.mxu1 %vm4384_vm0, %v4385_v1 }
 0x33b   :  { %3740 = vmatpush3.bf16.msra.mxu0 %v4649_v38 }
 0x33c   :  { %3741 = vmatprep.subr.bf16.mxu0 %v4383_v0  ;;  %3788 = vmatpush3.bf16.msra.mxu1 %v4590_v57 }
 0x33d   :  { %3789 = vmatprep.subr.bf16.mxu1 %v4383_v0 }
 0x33f   :  { %3743 = vmatpush3.bf16.msra.mxu0 %v4659_v42 }
 0x340   :  { %3744 = vmatprep.subr.bf16.mxu0 %v4383_v0  ;;  %3791 = vmatpush3.bf16.msra.mxu1 %v4598_v60 }
 0x341   :  { %3792 = vmatprep.subr.bf16.mxu1 %v4383_v0 }
 0x343   :  { %3746 = vmatpush3.bf16.msra.mxu0 %v4665_v45 }
 0x344   :  { %3747 = vmatprep.subr.bf16.mxu0 %v4383_v0  ;;  %3794 = vmatpush3.bf16.msra.mxu1 %v4604_v63 }
 0x345   :  { %3795 = vmatprep.subr.bf16.mxu1 %v4383_v0 }
 0x347   :  { %3749 = vmatpush3.bf16.msra.mxu0 %v4671_v49 }
 0x348   :  { %v730_v32 = vpop.f32.mrb[4].mxu1  ;;  %3750 = vmatprep.subr.bf16.mxu0 %v4383_v0  ;;  %3797 = vmatpush3.bf16.msra.mxu1 %v4620_v4 }
 0x349   :  { %v4144_v35 = vadd.f32 %v4754_v18, %v730_v32  ;;  %v2845_v36 = vpop.f32.mrb[5].mxu1  ;;  %3798 = vmatprep.subr.bf16.mxu1 %v4383_v0 }
 0x34b   :  { %4187 = vtanh.f32 %v4144_v35  ;;  %3752 = vmatpush3.bf16.msra.mxu0 %v4677_v53 }
 0x34c   :  { %3753 = vmatprep.subr.bf16.mxu0 %v4383_v0  ;;  %3800 = vmatpush3.bf16.msra.mxu1 %v4624_v10 }
 0x34d   :  { %3801 = vmatprep.subr.bf16.mxu1 %v4383_v0 }
 0x34f   :  { %3755 = vmatpush3.bf16.msra.mxu0 %v4683_v58 }
 0x350   :  { %3756 = vmatprep.subr.bf16.mxu0 %v4383_v0  ;;  %3803 = vmatpush3.bf16.msra.mxu1 %v4628_v17 }
 0x351   :  { %3804 = vmatprep.subr.bf16.mxu1 %v4383_v0 }
 0x353   :  { %3758 = vmatpush3.bf16.msra.mxu0 %v4689_v62 }
 0x354   :  { %3831 = vmatprep.subr.bf16.mxu0 %v4383_v0  ;;  %3806 = vmatpush3.bf16.msra.mxu1 %v4631_v22 }
 0x355   :  { %v4188_v37 = vpop.eup %4187  ;;  %3807 = vmatprep.subr.bf16.mxu1 %v4383_v0 }
 0x356   :  { %736 = vst [vmem:[#allocation2] sm:$0x2] %v4188_v37  ;;  %2949 = vmatmul.mubr.f32.vlgmr.msra.gmra.mrb[12].mxu0 %v4188_v37  ;;  %v2037_v37 = vld [vmem:[#allocation12 + $0x48] sm:$0xff] }
 0x357   :  { %3833 = vmatpush3.bf16.msra.mxu0 %v4552_v9  ;;  %3088 = vmatprep.mubr.msk.f32.mxu0 %vm4384_vm0, %v4385_v1 }
 0x358   :  { %3834 = vmatprep.subr.bf16.mxu0 %v4383_v0 }
 0x35b   :  { %3836 = vmatpush3.bf16.msra.mxu0 %v4555_v15 }
 0x35c   :  { %3837 = vmatprep.subr.bf16.mxu0 %v4383_v0 }
 0x35f   :  { %3839 = vmatpush3.bf16.msra.mxu0 %v4559_v21 }
 0x360   :  { %3840 = vmatprep.subr.bf16.mxu0 %v4383_v0 }
 0x363   :  { %3842 = vmatpush3.bf16.msra.mxu0 %v4563_v28 }
 0x364   :  { %3843 = vmatprep.subr.bf16.mxu0 %v4383_v0 }
 0x367   :  { %3845 = vmatpush3.bf16.msra.mxu0 %v4567_v34 }
 0x368   :  { %3846 = vmatprep.subr.bf16.mxu0 %v4383_v0 }
 0x36b   :  { %3848 = vmatpush3.bf16.msra.mxu0 %v4571_v40 }
 0x36c   :  { %3849 = vmatprep.subr.bf16.mxu0 %v4383_v0 }
 0x36f   :  { %3851 = vmatpush3.bf16.msra.mxu0 %v4575_v46 }
 0x370   :  { %3852 = vmatprep.subr.bf16.mxu0 %v4383_v0 }
 0x373   :  { %3854 = vmatpush3.bf16.msra.mxu0 %v4579_v50 }
 0x374   :  { %3855 = vmatprep.subr.bf16.mxu0 %v4383_v0 }
 0x409   :  { %v1018_v41 = vpop.f32.mrb[6].mxu1 }
 0x40a   :  { %v1022_v43 = vadd.f32 %v1018_v41, %v277_v39  ;;  %v2985_v44 = vpop.f32.mrb[7].mxu1  ;;  %v2039_v39 = vld [vmem:[#allocation12 + $0x58] sm:$0xff] }
 0x40c   :  { %4189 = vtanh.f32 %v1022_v43  ;;  %v2041_v43 = vld [vmem:[#allocation12 + $0x68] sm:$0xff] }
 0x416   :  { %v4190_v47 = vpop.eup %4189 }
 0x417   :  { %3019 = vmatmul.mubr.f32.vlgmr.msra.gmra.mrb[8].mxu1 %v4190_v47  ;;  %3089 = vmatmul.mubr.f32.vlgmr.msra.gmra.mrb[14].mxu0 %v4190_v47  ;;  %v2042_v47 = vld [vmem:[#allocation12 + $0x70] sm:$0xff] }
 0x418   :  { %3809 = vmatpush3.bf16.msra.mxu1 %v4646_v33  ;;  %3053 = vmatprep.mubr.msk.f32.mxu1 %vm4384_vm0, %v4385_v1 }
 0x419   :  { %3810 = vmatprep.subr.bf16.mxu1 %v4383_v0  ;;  %3857 = vmatpush3.bf16.msra.mxu0 %v4583_v54 }
 0x41a   :  { %3858 = vmatprep.subr.bf16.mxu0 %v4383_v0  ;;  %3123 = vmatprep.mubr.msk.f32.mxu0 %vm4384_vm0, %v4385_v1 }
 0x41c   :  { %3812 = vmatpush3.bf16.msra.mxu1 %v4649_v38 }
 0x41d   :  { %3813 = vmatprep.subr.bf16.mxu1 %v4383_v0  ;;  %3860 = vmatpush3.bf16.msra.mxu0 %v4590_v57 }
 0x41e   :  { %3861 = vmatprep.subr.bf16.mxu0 %v4383_v0 }
 0x420   :  { %3815 = vmatpush3.bf16.msra.mxu1 %v4659_v42 }
 0x421   :  { %3816 = vmatprep.subr.bf16.mxu1 %v4383_v0  ;;  %3863 = vmatpush3.bf16.msra.mxu0 %v4598_v60 }
 0x422   :  { %3864 = vmatprep.subr.bf16.mxu0 %v4383_v0 }
 0x424   :  { %3818 = vmatpush3.bf16.msra.mxu1 %v4665_v45 }
 0x425   :  { %3819 = vmatprep.subr.bf16.mxu1 %v4383_v0  ;;  %3866 = vmatpush3.bf16.msra.mxu0 %v4604_v63 }
 0x426   :  { %3867 = vmatprep.subr.bf16.mxu0 %v4383_v0 }
 0x428   :  { %3821 = vmatpush3.bf16.msra.mxu1 %v4671_v49 }
 0x429   :  { %v945_v48 = vpop.f32.mrb[12].mxu0  ;;  %3822 = vmatprep.subr.bf16.mxu1 %v4383_v0  ;;  %3869 = vmatpush3.bf16.msra.mxu0 %v4620_v4 }
 0x42a   :  { %v4145_v51 = vadd.f32 %v4754_v18, %v945_v48  ;;  %v2950_v52 = vpop.f32.mrb[13].mxu0  ;;  %3870 = vmatprep.subr.bf16.mxu0 %v4383_v0  ;;  %v2043_v48 = vld [vmem:[#allocation12 + $0x78] sm:$0xff] }
 0x42c   :  { %4191 = vtanh.f32 %v4145_v51  ;;  %3824 = vmatpush3.bf16.msra.mxu1 %v4677_v53  ;;  %v4141_v51 = vpack.c.bf16 %v2043_v48, %v2042_v47 }
 0x42d   :  { %3825 = vmatprep.subr.bf16.mxu1 %v4383_v0  ;;  %3872 = vmatpush3.bf16.msra.mxu0 %v4624_v10 }
 0x42e   :  { %3873 = vmatprep.subr.bf16.mxu0 %v4383_v0 }
 0x430   :  { %3827 = vmatpush3.bf16.msra.mxu1 %v4683_v58 }
 0x431   :  { %3828 = vmatprep.subr.bf16.mxu1 %v4383_v0  ;;  %3875 = vmatpush3.bf16.msra.mxu0 %v4628_v17 }
 0x432   :  { %3876 = vmatprep.subr.bf16.mxu0 %v4383_v0 }
 0x434   :  { %3830 = vmatpush3.bf16.msra.mxu1 %v4689_v62 }
 0x435   :  { %3903 = vmatprep.subr.bf16.mxu1 %v4383_v0  ;;  %3878 = vmatpush3.bf16.msra.mxu0 %v4631_v22 }
 0x436   :  { %v4192_v55 = vpop.eup %4191  ;;  %3879 = vmatprep.subr.bf16.mxu0 %v4383_v0 }
 0x437   :  { %951 = vst [vmem:[#allocation2 + $0x1] sm:$0x2] %v4192_v55  ;;  %3054 = vmatmul.mubr.f32.vlgmr.msra.gmra.mrb[8].mxu1 %v4192_v55 }
 0x438   :  { %3905 = vmatpush3.bf16.msra.mxu1 %v4552_v9  ;;  %3193 = vmatprep.mubr.msk.f32.mxu1 %vm4384_vm0, %v4385_v1 }
 0x439   :  { %3906 = vmatprep.subr.bf16.mxu1 %v4383_v0 }
 0x43c   :  { %3908 = vmatpush3.bf16.msra.mxu1 %v4555_v15 }
 0x43d   :  { %3909 = vmatprep.subr.bf16.mxu1 %v4383_v0 }
 0x440   :  { %3911 = vmatpush3.bf16.msra.mxu1 %v4559_v21 }
 0x441   :  { %3912 = vmatprep.subr.bf16.mxu1 %v4383_v0 }
 0x444   :  { %3914 = vmatpush3.bf16.msra.mxu1 %v4563_v28 }
 0x445   :  { %3915 = vmatprep.subr.bf16.mxu1 %v4383_v0 }
 0x448   :  { %3917 = vmatpush3.bf16.msra.mxu1 %v4567_v34 }
 0x449   :  { %3918 = vmatprep.subr.bf16.mxu1 %v4383_v0 }
 0x44c   :  { %3920 = vmatpush3.bf16.msra.mxu1 %v4571_v40 }
 0x44d   :  { %3921 = vmatprep.subr.bf16.mxu1 %v4383_v0 }
 0x450   :  { %3923 = vmatpush3.bf16.msra.mxu1 %v4575_v46 }
 0x451   :  { %3924 = vmatprep.subr.bf16.mxu1 %v4383_v0 }
 0x454   :  { %3926 = vmatpush3.bf16.msra.mxu1 %v4579_v50 }
 0x455   :  { %3927 = vmatprep.subr.bf16.mxu1 %v4383_v0 }
 0x4ea   :  { %v1233_v59 = vpop.f32.mrb[14].mxu0 }
 0x4eb   :  { %v1237_v61 = vadd.f32 %v1233_v59, %v282_v56  ;;  %v3090_v2 = vpop.f32.mrb[15].mxu0 }
 0x4ec   :  { %v2142_v2 = vld [vmem:[%s5111_s8] ss:$0 sm:$0xff] }
 0x4ed   :  { %4193 = vtanh.f32 %v1237_v61 }
 0x4f7   :  { %v4194_v3 = vpop.eup %4193 }
 0x4f8   :  { %3124 = vmatmul.mubr.f32.vlgmr.msra.gmra.mrb[16].mxu0 %v4194_v3  ;;  %3194 = vmatmul.mubr.f32.vlgmr.msra.gmra.mrb[10].mxu1 %v4194_v3 }
 0x4f9   :  { %3881 = vmatpush3.bf16.msra.mxu0 %v4646_v33  ;;  %3158 = vmatprep.mubr.msk.f32.mxu0 %vm4384_vm0, %v4385_v1 }
 0x4fa   :  { %3882 = vmatprep.subr.bf16.mxu0 %v4383_v0  ;;  %3929 = vmatpush3.bf16.msra.mxu1 %v4583_v54 }
 0x4fb   :  { %3930 = vmatprep.subr.bf16.mxu1 %v4383_v0  ;;  %3228 = vmatprep.mubr.msk.f32.mxu1 %vm4384_vm0, %v4385_v1 }
 0x4fd   :  { %3884 = vmatpush3.bf16.msra.mxu0 %v4649_v38 }
 0x4fe   :  { %3885 = vmatprep.subr.bf16.mxu0 %v4383_v0  ;;  %3932 = vmatpush3.bf16.msra.mxu1 %v4590_v57 }
 0x4ff   :  { %3933 = vmatprep.subr.bf16.mxu1 %v4383_v0 }
 0x501   :  { %3887 = vmatpush3.bf16.msra.mxu0 %v4659_v42 }
 0x502   :  { %3888 = vmatprep.subr.bf16.mxu0 %v4383_v0  ;;  %3935 = vmatpush3.bf16.msra.mxu1 %v4598_v60 }
 0x503   :  { %3936 = vmatprep.subr.bf16.mxu1 %v4383_v0 }
 0x505   :  { %3890 = vmatpush3.bf16.msra.mxu0 %v4665_v45 }
 0x506   :  { %3891 = vmatprep.subr.bf16.mxu0 %v4383_v0  ;;  %3938 = vmatpush3.bf16.msra.mxu1 %v4604_v63 }
 0x507   :  { %3939 = vmatprep.subr.bf16.mxu1 %v4383_v0 }
 0x509   :  { %3893 = vmatpush3.bf16.msra.mxu0 %v4671_v49 }
 0x50a   :  { %v1160_v6 = vpop.f32.mrb[8].mxu1  ;;  %3894 = vmatprep.subr.bf16.mxu0 %v4383_v0  ;;  %3941 = vmatpush3.bf16.msra.mxu1 %v4620_v4 }
 0x50b   :  { %v4146_v11 = vadd.f32 %v4754_v18, %v1160_v6  ;;  %v3055_v12 = vpop.f32.mrb[9].mxu1  ;;  %3942 = vmatprep.subr.bf16.mxu1 %v4383_v0 }
 0x50d   :  { %4195 = vtanh.f32 %v4146_v11  ;;  %3896 = vmatpush3.bf16.msra.mxu0 %v4677_v53 }
 0x50e   :  { %3897 = vmatprep.subr.bf16.mxu0 %v4383_v0  ;;  %3944 = vmatpush3.bf16.msra.mxu1 %v4624_v10 }
 0x50f   :  { %3945 = vmatprep.subr.bf16.mxu1 %v4383_v0 }
 0x511   :  { %3899 = vmatpush3.bf16.msra.mxu0 %v4683_v58 }
 0x512   :  { %3900 = vmatprep.subr.bf16.mxu0 %v4383_v0  ;;  %3947 = vmatpush3.bf16.msra.mxu1 %v4628_v17 }
 0x513   :  { %3948 = vmatprep.subr.bf16.mxu1 %v4383_v0 }
 0x515   :  { %3902 = vmatpush3.bf16.msra.mxu0 %v4689_v62 }
 0x516   :  { %3975 = vmatprep.subr.bf16.mxu0 %v4383_v0  ;;  %3950 = vmatpush3.bf16.msra.mxu1 %v4631_v22 }
 0x517   :  { %v4196_v13 = vpop.eup %4195  ;;  %3951 = vmatprep.subr.bf16.mxu1 %v4383_v0 }
 0x518   :  { %1166 = vst [vmem:[#allocation2 + $0x2] sm:$0x2] %v4196_v13  ;;  %3159 = vmatmul.mubr.f32.vlgmr.msra.gmra.mrb[16].mxu0 %v4196_v13 }
 0x519   :  { %3977 = vmatpush3.bf16.msra.mxu0 %v4552_v9  ;;  %3298 = vmatprep.mubr.msk.f32.mxu0 %vm4384_vm0, %v4385_v1 }
 0x51a   :  { %3978 = vmatprep.subr.bf16.mxu0 %v4383_v0 }
 0x51d   :  { %3980 = vmatpush3.bf16.msra.mxu0 %v4555_v15 }
 0x51e   :  { %3981 = vmatprep.subr.bf16.mxu0 %v4383_v0 }
 0x521   :  { %3983 = vmatpush3.bf16.msra.mxu0 %v4559_v21 }
 0x522   :  { %3984 = vmatprep.subr.bf16.mxu0 %v4383_v0 }
 0x525   :  { %3986 = vmatpush3.bf16.msra.mxu0 %v4563_v28 }
 0x526   :  { %3987 = vmatprep.subr.bf16.mxu0 %v4383_v0 }
 0x529   :  { %3989 = vmatpush3.bf16.msra.mxu0 %v4567_v34 }
 0x52a   :  { %3990 = vmatprep.subr.bf16.mxu0 %v4383_v0 }
 0x52d   :  { %3992 = vmatpush3.bf16.msra.mxu0 %v4571_v40 }
 0x52e   :  { %3993 = vmatprep.subr.bf16.mxu0 %v4383_v0 }
 0x531   :  { %3995 = vmatpush3.bf16.msra.mxu0 %v4575_v46 }
 0x532   :  { %3996 = vmatprep.subr.bf16.mxu0 %v4383_v0 }
 0x535   :  { %3998 = vmatpush3.bf16.msra.mxu0 %v4579_v50 }
 0x536   :  { %3999 = vmatprep.subr.bf16.mxu0 %v4383_v0 }
 0x5cb   :  { %v1448_v16 = vpop.f32.mrb[10].mxu1 }
 0x5cc   :  { %v1452_v19 = vadd.f32 %v1448_v16, %v287_v14  ;;  %v3195_v20 = vpop.f32.mrb[11].mxu1 }
 0x5ce   :  { %4197 = vtanh.f32 %v1452_v19 }
 0x5d8   :  { %v4198_v24 = vpop.eup %4197 }
 0x5d9   :  { %3229 = vmatmul.mubr.f32.vlgmr.msra.gmra.mrb[12].mxu1 %v4198_v24  ;;  %3299 = vmatmul.mubr.f32.vlgmr.msra.gmra.mrb[18].mxu0 %v4198_v24 }
 0x5da   :  { %3953 = vmatpush3.bf16.msra.mxu1 %v4646_v33  ;;  %3263 = vmatprep.mubr.msk.f32.mxu1 %vm4384_vm0, %v4385_v1 }
 0x5db   :  { %3954 = vmatprep.subr.bf16.mxu1 %v4383_v0  ;;  %4001 = vmatpush3.bf16.msra.mxu0 %v4583_v54 }
 0x5dc   :  { %4002 = vmatprep.subr.bf16.mxu0 %v4383_v0  ;;  %3333 = vmatprep.mubr.msk.f32.mxu0 %vm4384_vm0, %v4385_v1 }
 0x5de   :  { %3956 = vmatpush3.bf16.msra.mxu1 %v4649_v38 }
 0x5df   :  { %3957 = vmatprep.subr.bf16.mxu1 %v4383_v0  ;;  %4004 = vmatpush3.bf16.msra.mxu0 %v4590_v57 }
 0x5e0   :  { %4005 = vmatprep.subr.bf16.mxu0 %v4383_v0 }
 0x5e2   :  { %3959 = vmatpush3.bf16.msra.mxu1 %v4659_v42 }
 0x5e3   :  { %3960 = vmatprep.subr.bf16.mxu1 %v4383_v0  ;;  %4007 = vmatpush3.bf16.msra.mxu0 %v4598_v60 }
 0x5e4   :  { %4008 = vmatprep.subr.bf16.mxu0 %v4383_v0 }
 0x5e6   :  { %3962 = vmatpush3.bf16.msra.mxu1 %v4665_v45 }
 0x5e7   :  { %3963 = vmatprep.subr.bf16.mxu1 %v4383_v0  ;;  %4010 = vmatpush3.bf16.msra.mxu0 %v4604_v63 }
 0x5e8   :  { %4011 = vmatprep.subr.bf16.mxu0 %v4383_v0 }
 0x5ea   :  { %3965 = vmatpush3.bf16.msra.mxu1 %v4671_v49 }
 0x5eb   :  { %v1375_v5 = vpop.f32.mrb[16].mxu0  ;;  %3966 = vmatprep.subr.bf16.mxu1 %v4383_v0  ;;  %4013 = vmatpush3.bf16.msra.mxu0 %v4620_v4 }
 0x5ec   :  { %v4147_v25 = vadd.f32 %v4754_v18, %v1375_v5  ;;  %v3160_v26 = vpop.f32.mrb[17].mxu0  ;;  %4014 = vmatprep.subr.bf16.mxu0 %v4383_v0 }
 0x5ee   :  { %4199 = vtanh.f32 %v4147_v25  ;;  %3968 = vmatpush3.bf16.msra.mxu1 %v4677_v53 }
 0x5ef   :  { %3969 = vmatprep.subr.bf16.mxu1 %v4383_v0  ;;  %4016 = vmatpush3.bf16.msra.mxu0 %v4624_v10 }
 0x5f0   :  { %4017 = vmatprep.subr.bf16.mxu0 %v4383_v0 }
 0x5f2   :  { %3971 = vmatpush3.bf16.msra.mxu1 %v4683_v58 }
 0x5f3   :  { %3972 = vmatprep.subr.bf16.mxu1 %v4383_v0  ;;  %4019 = vmatpush3.bf16.msra.mxu0 %v4628_v17 }
 0x5f4   :  { %4020 = vmatprep.subr.bf16.mxu0 %v4383_v0 }
 0x5f6   :  { %3974 = vmatpush3.bf16.msra.mxu1 %v4689_v62 }
 0x5f7   :  { %4047 = vmatprep.subr.bf16.mxu1 %v4383_v0  ;;  %4022 = vmatpush3.bf16.msra.mxu0 %v4631_v22 }
 0x5f8   :  { %v4200_v27 = vpop.eup %4199  ;;  %4023 = vmatprep.subr.bf16.mxu0 %v4383_v0 }
 0x5f9   :  { %1381 = vst [vmem:[#allocation2 + $0x3] sm:$0x2] %v4200_v27  ;;  %3264 = vmatmul.mubr.f32.vlgmr.msra.gmra.mrb[12].mxu1 %v4200_v27 }
 0x5fa   :  { %4049 = vmatpush3.bf16.msra.mxu1 %v4552_v9  ;;  %3403 = vmatprep.mubr.msk.f32.mxu1 %vm4384_vm0, %v4385_v1  ;;  %v292_v9 = vadd.f32 %v4641_v23, %v4727_v8  ;;  %v2033_v8 = vld [vmem:[#allocation12 + $0x28] sm:$0xff] }
 0x5fb   :  { %4050 = vmatprep.subr.bf16.mxu1 %v4383_v0 }
 0x5fe   :  { %4052 = vmatpush3.bf16.msra.mxu1 %v4555_v15 }
 0x5ff   :  { %4053 = vmatprep.subr.bf16.mxu1 %v4383_v0 }
 0x602   :  { %4055 = vmatpush3.bf16.msra.mxu1 %v4559_v21 }
 0x603   :  { %4056 = vmatprep.subr.bf16.mxu1 %v4383_v0 }
 0x606   :  { %4058 = vmatpush3.bf16.msra.mxu1 %v4563_v28 }
 0x607   :  { %4059 = vmatprep.subr.bf16.mxu1 %v4383_v0 }
 0x60a   :  { %4061 = vmatpush3.bf16.msra.mxu1 %v4567_v34 }
 0x60b   :  { %4062 = vmatprep.subr.bf16.mxu1 %v4383_v0 }
 0x60e   :  { %4064 = vmatpush3.bf16.msra.mxu1 %v4571_v40 }
 0x60f   :  { %4065 = vmatprep.subr.bf16.mxu1 %v4383_v0 }
 0x612   :  { %4067 = vmatpush3.bf16.msra.mxu1 %v4575_v46 }
 0x613   :  { %4068 = vmatprep.subr.bf16.mxu1 %v4383_v0 }
 0x616   :  { %4070 = vmatpush3.bf16.msra.mxu1 %v4579_v50 }
 0x617   :  { %4071 = vmatprep.subr.bf16.mxu1 %v4383_v0 }
 0x6ac   :  { %v1663_v15 = vpop.f32.mrb[18].mxu0 }
 0x6ad   :  { %v1667_v21 = vadd.f32 %v1663_v15, %v292_v9  ;;  %v3300_v28 = vpop.f32.mrb[19].mxu0 }
 0x6af   :  { %4201 = vtanh.f32 %v1667_v21 }
 0x6b9   :  { %v4202_v34 = vpop.eup %4201 }
 0x6ba   :  { %3334 = vmatmul.mubr.f32.vlgmr.msra.gmra.mrb[20].mxu0 %v4202_v34  ;;  %3404 = vmatmul.mubr.f32.vlgmr.msra.gmra.mrb[14].mxu1 %v4202_v34 }
 0x6bb   :  { %4025 = vmatpush3.bf16.msra.mxu0 %v4646_v33  ;;  %3368 = vmatprep.mubr.msk.f32.mxu0 %vm4384_vm0, %v4385_v1 }
 0x6bc   :  { %4026 = vmatprep.subr.bf16.mxu0 %v4383_v0  ;;  %4073 = vmatpush3.bf16.msra.mxu1 %v4583_v54 }
 0x6bd   :  { %4074 = vmatprep.subr.bf16.mxu1 %v4383_v0  ;;  %3438 = vmatprep.mubr.msk.f32.mxu1 %vm4384_vm0, %v4385_v1 }
 0x6bf   :  { %4028 = vmatpush3.bf16.msra.mxu0 %v4649_v38 }
 0x6c0   :  { %4029 = vmatprep.subr.bf16.mxu0 %v4383_v0  ;;  %4076 = vmatpush3.bf16.msra.mxu1 %v4590_v57  ;;  %v2028_v57 = vld [vmem:[#allocation12] sm:$0xff] }
 0x6c1   :  { %4077 = vmatprep.subr.bf16.mxu1 %v4383_v0 }
 0x6c3   :  { %4031 = vmatpush3.bf16.msra.mxu0 %v4659_v42 }
 0x6c4   :  { %4032 = vmatprep.subr.bf16.mxu0 %v4383_v0  ;;  %4079 = vmatpush3.bf16.msra.mxu1 %v4598_v60  ;;  %v2029_v60 = vld [vmem:[#allocation12 + $0x8] sm:$0xff] }
 0x6c5   :  { %4080 = vmatprep.subr.bf16.mxu1 %v4383_v0 }
 0x6c7   :  { %4034 = vmatpush3.bf16.msra.mxu0 %v4665_v45 }
 0x6c8   :  { %4035 = vmatprep.subr.bf16.mxu0 %v4383_v0  ;;  %4082 = vmatpush3.bf16.msra.mxu1 %v4604_v63  ;;  %v2030_v63 = vld [vmem:[#allocation12 + $0x10] sm:$0xff] }
 0x6c9   :  { %4083 = vmatprep.subr.bf16.mxu1 %v4383_v0 }
 0x6cb   :  { %4037 = vmatpush3.bf16.msra.mxu0 %v4671_v49 }
 0x6cc   :  { %v1590_v40 = vpop.f32.mrb[12].mxu1  ;;  %4038 = vmatprep.subr.bf16.mxu0 %v4383_v0  ;;  %4085 = vmatpush3.bf16.msra.mxu1 %v4620_v4  ;;  %v4120_v4 = vpack.c.bf16 %v2029_v60, %v2028_v57 }
 0x6cd   :  { %v4148_v46 = vadd.f32 %v4754_v18, %v1590_v40  ;;  %v3265_v50 = vpop.f32.mrb[13].mxu1  ;;  %4086 = vmatprep.subr.bf16.mxu1 %v4383_v0 }
 0x6cf   :  { %4203 = vtanh.f32 %v4148_v46  ;;  %4040 = vmatpush3.bf16.msra.mxu0 %v4677_v53 }
 0x6d0   :  { %4041 = vmatprep.subr.bf16.mxu0 %v4383_v0  ;;  %4088 = vmatpush3.bf16.msra.mxu1 %v4624_v10  ;;  %v2031_v10 = vld [vmem:[#allocation12 + $0x18] sm:$0xff] }
 0x6d1   :  { %4089 = vmatprep.subr.bf16.mxu1 %v4383_v0 }
 0x6d3   :  { %4043 = vmatpush3.bf16.msra.mxu0 %v4683_v58 }
 0x6d4   :  { %4044 = vmatprep.subr.bf16.mxu0 %v4383_v0  ;;  %4091 = vmatpush3.bf16.msra.mxu1 %v4628_v17  ;;  %v4123_v17 = vpack.c.bf16 %v2031_v10, %v2030_v63 }
 0x6d5   :  { %4092 = vmatprep.subr.bf16.mxu1 %v4383_v0 }
 0x6d7   :  { %4046 = vmatpush3.bf16.msra.mxu0 %v4689_v62 }
 0x6d8   :  { %4094 = vmatpush3.bf16.msra.mxu1 %v4631_v22  ;;  %4119 = vmatprep.subr.bf16.mxu0 %v4383_v0  ;;  %v2032_v22 = vld [vmem:[#allocation12 + $0x20] sm:$0xff] }
 0x6d9   :  { %v4204_v54 = vpop.eup %4203  ;;  %4095 = vmatprep.subr.bf16.mxu1 %v4383_v0  ;;  %v4126_v29 = vpack.c.bf16 %v2033_v8, %v2032_v22 }
 0x6da   :  { %1596 = vst [vmem:[#allocation2 + $0x4] sm:$0x2] %v4204_v54  ;;  %3369 = vmatmul.mubr.f32.vlgmr.msra.gmra.mrb[20].mxu0 %v4204_v54 }
 0x6db   :  { %3508 = vmatprep.mubr.msk.f32.mxu0 %vm4384_vm0, %v4385_v1  ;;  %4121 = vmatpush3.bf16.msra.mxu0 %v4120_v4 }
 0x6dc   :  { %4122 = vmatprep.subr.bf16.mxu0 %v4383_v0 }
 0x6df   :  { %4124 = vmatpush3.bf16.msra.mxu0 %v4123_v17 }
 0x6e0   :  { %4125 = vmatprep.subr.bf16.mxu0 %v4383_v0 }
 0x6e3   :  { %4127 = vmatpush3.bf16.msra.mxu0 %v4126_v29 }
 0x6e4   :  { %4128 = vmatprep.subr.bf16.mxu0 %v4383_v0 }
 0x78d   :  { %v1878_v31 = vpop.f32.mrb[14].mxu1 }
 0x78e   :  { %v1882_v32 = vadd.f32 %v1878_v31, %v297_v30  ;;  %v3405_v35 = vpop.f32.mrb[15].mxu1 }
 0x790   :  { %4205 = vtanh.f32 %v1882_v32 }
 0x79a   :  { %v4206_v36 = vpop.eup %4205 }
 0x79b   :  { %3439 = vmatmul.mubr.f32.vlgmr.msra.gmra.mrb[16].mxu1 %v4206_v36 }
 0x79c   :  { %4097 = vmatpush3.bf16.msra.mxu1 %v4646_v33  ;;  %3473 = vmatprep.mubr.msk.f32.mxu1 %vm4384_vm0, %v4385_v1 }
 0x79d   :  { %4098 = vmatprep.subr.bf16.mxu1 %v4383_v0 }
 0x7a0   :  { %4100 = vmatpush3.bf16.msra.mxu1 %v4649_v38 }
 0x7a1   :  { %4101 = vmatprep.subr.bf16.mxu1 %v4383_v0 }
 0x7a4   :  { %4103 = vmatpush3.bf16.msra.mxu1 %v4659_v42  ;;  %v2034_v42 = vld [vmem:[#allocation12 + $0x30] sm:$0xff] }
 0x7a5   :  { %4104 = vmatprep.subr.bf16.mxu1 %v4383_v0 }
 0x7a8   :  { %4106 = vmatpush3.bf16.msra.mxu1 %v4665_v45  ;;  %v2035_v45 = vld [vmem:[#allocation12 + $0x38] sm:$0xff] }
 0x7a9   :  { %4107 = vmatprep.subr.bf16.mxu1 %v4383_v0 }
 0x7ac   :  { %4109 = vmatpush3.bf16.msra.mxu1 %v4671_v49  ;;  %v4129_v49 = vpack.c.bf16 %v2035_v45, %v2034_v42 }
 0x7ad   :  { %v1805_v23 = vpop.f32.mrb[20].mxu0  ;;  %4110 = vmatprep.subr.bf16.mxu1 %v4383_v0 }
 0x7ae   :  { %v4149_v1 = vadd.f32 %v4754_v18, %v1805_v23  ;;  %v3370_v33 = vpop.f32.mrb[21].mxu0  ;;  %4130 = vmatpush3.bf16.msra.mxu0 %v4129_v49 }
 0x7af   :  { %4131 = vmatprep.subr.bf16.mxu0 %v4383_v0 }
 0x7b0   :  { %4207 = vtanh.f32 %v4149_v1  ;;  %4112 = vmatpush3.bf16.msra.mxu1 %v4677_v53  ;;  %v4132_v53 = vpack.c.bf16 %v2037_v37, %v2036_v7 }
 0x7b1   :  { %4113 = vmatprep.subr.bf16.mxu1 %v4383_v0 }
 0x7b2   :  { %4133 = vmatpush3.bf16.msra.mxu0 %v4132_v53 }
 0x7b3   :  { %4134 = vmatprep.subr.bf16.mxu0 %v4383_v0 }
 0x7b4   :  { %4115 = vmatpush3.bf16.msra.mxu1 %v4683_v58  ;;  %v2038_v58 = vld [vmem:[#allocation12 + $0x50] sm:$0xff] }
 0x7b5   :  { %4116 = vmatprep.subr.bf16.mxu1 %v4383_v0  ;;  %v4135_v41 = vpack.c.bf16 %v2039_v39, %v2038_v58 }
 0x7b7   :  { %4136 = vmatpush3.bf16.msra.mxu0 %v4135_v41 }
 0x7b8   :  { %4118 = vmatpush3.bf16.msra.mxu1 %v4689_v62  ;;  %4137 = vmatprep.subr.bf16.mxu0 %v4383_v0  ;;  %v2040_v62 = vld [vmem:[#allocation12 + $0x60] sm:$0xff] }
 0x7b9   :  { %v4138_v44 = vpack.c.bf16 %v2041_v43, %v2040_v62 }
 0x7ba   :  { %v4208_v38 = vpop.eup %4207 }
 0x7bb   :  { %1811 = vst [vmem:[#allocation2 + $0x5] sm:$0x2] %v4208_v38  ;;  %3474 = vmatmul.mubr.f32.vlgmr.msra.gmra.mrb[16].mxu1 %v4208_v38  ;;  %4139 = vmatpush3.bf16.msra.mxu0 %v4138_v44 }
 0x7bc   :  { %4140 = vmatprep.subr.bf16.mxu0 %v4383_v0 }
 0x7bf   :  { %4142 = vmatpush3.bf16.msra.mxu0 %v4141_v51 }
 0x88e   :  { %v2020_v52 = vpop.f32.mrb[16].mxu1 }
 0x88f   :  { %v4150_v55 = vadd.f32 %v4754_v18, %v2020_v52  ;;  %v3475_v56 = vpop.f32.mrb[17].mxu1 }
 0x891   :  { %4209 = vtanh.f32 %v4150_v55 }
 0x89b   :  { %v4210_v59 = vpop.eup %4209 }
 0x89c   :  { %2026 = vst [vmem:[#allocation2 + $0x6] sm:$0x2] %v4210_v59 }
 0x8a3   :  { %v2027_v61 = vld [vmem:[#allocation2] sm:$0xff] }
 0x8a4   :  { %3509 = vmatmul.mubr.f32.vlgmr.msra.gmra.mrb[22].mxu0 %v2027_v61 }
 0x977   :  { %v2117_v3 = vpop.f32.mrb[22].mxu0 }
 0x978   :  { %v2118_v6 = vadd.f32 %v2142_v2, %v2117_v3  ;;  %v3510_v11 = vpop.f32.mrb[23].mxu0 }
 0x97a   :  { %2121 = vst [vmem:[#allocation14] sm:$0xff] %v2118_v6 }
 0x97b   :  { %4354 = shalt.err (!%p4351_p10)
}
 0x97c   :  { %s4355_s25 = scalar_lea.hbm %s5112_s9, 128 }
 0x97d   :  { %p4356_p11 = scmp.ne.s32.totalorder %s5112_s9, %s4355_s25  ;;  %p4359_p12 = scmp.lt.u32.totalorder %s4355_s25, %s5112_s9 }
 0x97f   :  { %p4361_p13 = pnand %p4359_p12, %p4356_p11 }
 0x981   :  { %4364 = shalt.err (!%p4361_p13)
}
 0x982   :  { %2131 = dma.vmem_to_hbm [thread:$0]  %s2129_s19, 128, %s5112_s9, [#allocation5]  }
 0x983   :  { %4373 = dma.done.wait [#allocation5], 128  }
 0x984   :  { %4374 = vsyncadd [#allocation5], 4294967168 }
 0x985   :  { %2135 = vsyncpa [#allocation4], 1 }
 0x986   :  { %2136 = vsyncpa [#allocation7], 1 }
 0x987   :  { %2137 = vsyncpa [#allocation10], 1 }
 0x988   :  { %2138 = vsyncpa [#allocation13], 1 }
 0x989   :  { %2139 = vsyncpa [#allocation5], 1 }

</bundles_post_ra>
